<compile_context>
chip_gen: v6e
topology: v6e:2x2x1
jax: 0.10.0
libtpu: 0.0.40
codegen_flags: <defaults>
</compile_context>

<pallas_src>
import jax
import jax.numpy as jnp
from jax import lax
from jax.experimental import pallas as pl
from jax.experimental.pallas import tpu as pltpu

KSIZE = 4   # Conv2d kernel_size
PAD = 2     # Conv2d padding


def _make_encoder_kernel(N, H, W):
    """Build the fused (conv+relu+pool) x2 + flatten kernel for a (N, H, W) batch."""
    # stage-1 geometry: conv k=4 pad=2 stride=1, then 2x2/2 max-pool (floor)
    Hc1, Wc1 = H + 1, W + 1
    Hm1, Wm1 = Hc1 - 1, Wc1 - 1          # full-res 2x2 window-max map
    Hp1, Wp1 = Hc1 // 2, Wc1 // 2
    # stage-2 geometry
    Hc2, Wc2 = Hp1 + 1, Wp1 + 1
    Hm2, Wm2 = Hc2 - 1, Wc2 - 1
    Hp2, Wp2 = Hc2 // 2, Wc2 // 2
    out_dim = Hp2 * Wp2

    def conv_relu_winmax(xp, w_ref, b_ref, Hc, Wc):
        """xp: (N, Hc+3, Wc+3) zero-padded input (value).
        Returns the full-resolution 2x2 window max of relu(conv4x4(xp) + b),
        shape (N, Hc-1, Wc-1)."""
        acc = jnp.zeros((N, Hc, Wc), jnp.float32)
        for dj in range(KSIZE):                       # hoist the lane shift ...
            xs = xp[:, :, dj:dj + Wc]                 # (N, Hc+3, Wc)
            for di in range(KSIZE):                   # ... reuse over sublane shifts
                acc = acc + w_ref[di, dj] * xs[:, di:di + Hc, :]
        r = jnp.maximum(acc + b_ref[0], 0.0)          # bias + ReLU
        Hm, Wm = Hc - 1, Wc - 1
        return jnp.maximum(                           # 2x2 window max (full res)
            jnp.maximum(r[:, :Hm, :Wm], r[:, 1:, :Wm]),
            jnp.maximum(r[:, :Hm, 1:], r[:, 1:, 1:]),
        )

    def kernel(x_ref, w1_ref, b1_ref, w2_ref, b2_ref, out_ref,
               xpad_ref, cds1_ref, s1pad_ref, cds2_ref):
        # ---- zero-pad raw input inside the kernel (no XLA pad / extra HBM copy) ----
        xpad_ref[...] = jnp.zeros_like(xpad_ref)
        xpad_ref[:, PAD:PAD + H, PAD:PAD + W] = x_ref[...]

        # ---- stage 1: conv4x4 + bias + ReLU + 2x2 window max (whole batch) ----
        m1 = conv_relu_winmax(xpad_ref[...], w1_ref, b1_ref, Hc1, Wc1)

        # stride-2 column pick (static lane windows)
        for j in range(Wp1):
            cds1_ref[:, :, j:j + 1] = m1[:, :, 2 * j:2 * j + 1]

        # stride-2 row pick, written straight into the zero-initialized padded
        # stage-2 input (fuses the pool downsample with the inter-stage pad)
        s1pad_ref[...] = jnp.zeros_like(s1pad_ref)
        for i in range(Hp1):
            s1pad_ref[:, PAD + i:PAD + i + 1, PAD:PAD + Wp1] = \
                cds1_ref[:, 2 * i:2 * i + 1, :]

        # ---- stage 2: conv4x4 + bias + ReLU + 2x2 window max ----
        m2 = conv_relu_winmax(s1pad_ref[...], w2_ref, b2_ref, Hc2, Wc2)

        for j in range(Wp2):
            cds2_ref[:, :, j:j + 1] = m2[:, :, 2 * j:2 * j + 1]

        # stride-2 row pick + flatten: lane-dense (N, 1, Hp2*Wp2) output block
        for i in range(Hp2):
            out_ref[:, :, Wp2 * i:Wp2 * (i + 1)] = cds2_ref[:, 2 * i:2 * i + 1, :]

    scratch_shapes = [
        pltpu.VMEM((N, H + 2 * PAD, W + 2 * PAD), jnp.float32),        # padded input
        pltpu.VMEM((N, Hm1, Wp1), jnp.float32),                        # col-downsampled m1
        pltpu.VMEM((N, Hp1 + 2 * PAD, Wp1 + 2 * PAD), jnp.float32),    # padded stage-2 input
        pltpu.VMEM((N, Hm2, Wp2), jnp.float32),                        # col-downsampled m2
    ]
    return kernel, scratch_shapes, out_dim


def encoder_forward(x, params):
    """x: (N, 1, H, W) float32 (PyTorch NCHW). Returns (N, Hp2*Wp2) flattened."""
    w1, b1, w2, b2 = params
    h = x[:, 0, :, :]                    # channel dim is 1 -> squeeze
    N, H, W = h.shape
    kernel, scratch_shapes, out_dim = _make_encoder_kernel(N, H, W)
    out = pl.pallas_call(
        kernel,
        out_shape=jax.ShapeDtypeStruct((N, 1, out_dim), jnp.float32),
        in_specs=[
            pl.BlockSpec(memory_space=pltpu.MemorySpace.VMEM),   # image batch
            pl.BlockSpec(memory_space=pltpu.MemorySpace.SMEM),   # w1 (4,4)
            pl.BlockSpec(memory_space=pltpu.MemorySpace.SMEM),   # b1 (1,)
            pl.BlockSpec(memory_space=pltpu.MemorySpace.SMEM),   # w2 (4,4)
            pl.BlockSpec(memory_space=pltpu.MemorySpace.SMEM),   # b2 (1,)
        ],
        out_specs=pl.BlockSpec(memory_space=pltpu.MemorySpace.VMEM),
        scratch_shapes=scratch_shapes,
    )(h, w1, b1, w2, b2)
    return out.reshape(N, out_dim)       # drop the size-1 middle dim (free)


def encoder_reference(x, params):
    """Pure-JAX reference (lax.conv + reduce_window) for verification."""
    w1, b1, w2, b2 = params

    def stage(h, w, b):
        out = lax.conv_general_dilated(
            h[:, None, :, :], w[None, None, :, :],
            window_strides=(1, 1), padding=((PAD, PAD), (PAD, PAD)),
            dimension_numbers=("NCHW", "OIHW", "NCHW"))
        out = jnp.maximum(out + b[0], 0.0)
        out = lax.reduce_window(out, -jnp.inf, lax.max,
                                (1, 1, 2, 2), (1, 1, 2, 2), "VALID")
        return out[:, 0]

    h = x[:, 0]
    h = stage(h, w1, b1)
    h = stage(h, w2, b2)
    return h.reshape(h.shape[0], -1)


if __name__ == "__main__":
    key = jax.random.PRNGKey(0)
    kx, kw1, kb1, kw2, kb2 = jax.random.split(key, 5)

    N, C, H, W = 2, 1, 16, 16
    x = jax.random.normal(kx, (N, C, H, W), jnp.float32)

    # Deterministic parameter init, mimicking PyTorch Conv2d default
    # (uniform in +/- 1/sqrt(fan_in), fan_in = 1*4*4 = 16).
    bound = 1.0 / (1 * KSIZE * KSIZE) ** 0.5
    w1 = jax.random.uniform(kw1, (KSIZE, KSIZE), jnp.float32, -bound, bound)
    b1 = jax.random.uniform(kb1, (1,), jnp.float32, -bound, bound)
    w2 = jax.random.uniform(kw2, (KSIZE, KSIZE), jnp.float32, -bound, bound)
    b2 = jax.random.uniform(kb2, (1,), jnp.float32, -bound, bound)
    params = (w1, b1, w2, b2)

    out = jax.block_until_ready(encoder_forward(x, params))
    ref = jax.block_until_ready(encoder_reference(x, params))

    # 16x16 -> conv 17x17 -> pool 8x8 -> conv 9x9 -> pool 4x4 -> flatten 16
    assert out.shape == (N, 16), out.shape
    assert jnp.allclose(out, ref, atol=1e-4, rtol=1e-4), \
        float(jnp.max(jnp.abs(out - ref)))
    print("KERNEL_OK")
</pallas_src>

<mosaic_0001>
module attributes {stable_mosaic.version = 11 : i64} {
  func.func @kernel(%arg0: memref<2x16x16xf32, #tpu.memory_space<vmem>>, %arg1: memref<4x4xf32, #tpu.memory_space<smem>>, %arg2: memref<1xf32, #tpu.memory_space<smem>>, %arg3: memref<4x4xf32, #tpu.memory_space<smem>>, %arg4: memref<1xf32, #tpu.memory_space<smem>>, %arg5: memref<2x1x16xf32, #tpu.memory_space<vmem>>, %arg6: memref<2x20x20xf32, #tpu.memory_space<vmem>>, %arg7: memref<2x16x8xf32, #tpu.memory_space<vmem>>, %arg8: memref<2x12x12xf32, #tpu.memory_space<vmem>>, %arg9: memref<2x8x4xf32, #tpu.memory_space<vmem>>) attributes {dimension_semantics = [], scalar_prefetch = 0 : i64, scratch_operands = 4 : i64, tpu.core_type = #tpu.core_type<tc>} {
    %cst = arith.constant 0.000000e+00 : f32
    %0 = vector.broadcast %cst : f32 to vector<2x20x20xf32>
    %c0 = arith.constant 0 : index
    %c0_0 = arith.constant 0 : index
    %c0_1 = arith.constant 0 : index
    %1 = vector.load %arg6[%c0, %c0_0, %c0_1] : memref<2x20x20xf32, #tpu.memory_space<vmem>>, vector<2x20x20xf32>
    tpu.vector_store %arg6[%c0, %c0_0, %c0_1], %0 {strides = array<i32>} : memref<2x20x20xf32, #tpu.memory_space<vmem>>, vector<2x20x20xf32>,
    %c0_2 = arith.constant 0 : index
    %c0_3 = arith.constant 0 : index
    %c0_4 = arith.constant 0 : index
    %2 = vector.load %arg0[%c0_2, %c0_3, %c0_4] : memref<2x16x16xf32, #tpu.memory_space<vmem>>, vector<2x16x16xf32>
    %c0_5 = arith.constant 0 : index
    %c2 = arith.constant 2 : index
    %c2_6 = arith.constant 2 : index
    %3 = vector.load %arg6[%c0_5, %c2, %c2_6] : memref<2x20x20xf32, #tpu.memory_space<vmem>>, vector<2x16x16xf32>
    tpu.vector_store %arg6[%c0_5, %c2, %c2_6], %2 {strides = array<i32>} : memref<2x20x20xf32, #tpu.memory_space<vmem>>, vector<2x16x16xf32>,
    %c0_7 = arith.constant 0 : index
    %c0_8 = arith.constant 0 : index
    %c0_9 = arith.constant 0 : index
    %4 = vector.load %arg6[%c0_7, %c0_8, %c0_9] : memref<2x20x20xf32, #tpu.memory_space<vmem>>, vector<2x20x20xf32>
    %cst_10 = arith.constant 0.000000e+00 : f32
    %5 = vector.broadcast %cst_10 : f32 to vector<2x17x17xf32>
    %6 = vector.extract_strided_slice %4 {offsets = [0, 0, 0], sizes = [2, 20, 17], strides = [1, 1, 1]} : vector<2x20x20xf32> to vector<2x20x17xf32>
    %c0_11 = arith.constant 0 : index
    %c0_12 = arith.constant 0 : index
    %7 = memref.load %arg1[%c0_11, %c0_12] : memref<4x4xf32, #tpu.memory_space<smem>>
    %8 = vector.extract_strided_slice %6 {offsets = [0, 0, 0], sizes = [2, 17, 17], strides = [1, 1, 1]} : vector<2x20x17xf32> to vector<2x17x17xf32>
    %9 = vector.broadcast %7 : f32 to vector<2x17x17xf32>
    %10 = arith.mulf %9, %8 : vector<2x17x17xf32>
    %11 = arith.addf %5, %10 : vector<2x17x17xf32>
    %c1 = arith.constant 1 : index
    %c0_13 = arith.constant 0 : index
    %12 = memref.load %arg1[%c1, %c0_13] : memref<4x4xf32, #tpu.memory_space<smem>>
    %13 = vector.extract_strided_slice %6 {offsets = [0, 1, 0], sizes = [2, 17, 17], strides = [1, 1, 1]} : vector<2x20x17xf32> to vector<2x17x17xf32>
    %14 = vector.broadcast %12 : f32 to vector<2x17x17xf32>
    %15 = arith.mulf %14, %13 : vector<2x17x17xf32>
    %16 = arith.addf %11, %15 : vector<2x17x17xf32>
    %c2_14 = arith.constant 2 : index
    %c0_15 = arith.constant 0 : index
    %17 = memref.load %arg1[%c2_14, %c0_15] : memref<4x4xf32, #tpu.memory_space<smem>>
    %18 = vector.extract_strided_slice %6 {offsets = [0, 2, 0], sizes = [2, 17, 17], strides = [1, 1, 1]} : vector<2x20x17xf32> to vector<2x17x17xf32>
    %19 = vector.broadcast %17 : f32 to vector<2x17x17xf32>
    %20 = arith.mulf %19, %18 : vector<2x17x17xf32>
    %21 = arith.addf %16, %20 : vector<2x17x17xf32>
    %c3 = arith.constant 3 : index
    %c0_16 = arith.constant 0 : index
    %22 = memref.load %arg1[%c3, %c0_16] : memref<4x4xf32, #tpu.memory_space<smem>>
    %23 = vector.extract_strided_slice %6 {offsets = [0, 3, 0], sizes = [2, 17, 17], strides = [1, 1, 1]} : vector<2x20x17xf32> to vector<2x17x17xf32>
    %24 = vector.broadcast %22 : f32 to vector<2x17x17xf32>
    %25 = arith.mulf %24, %23 : vector<2x17x17xf32>
    %26 = arith.addf %21, %25 : vector<2x17x17xf32>
    %27 = vector.extract_strided_slice %4 {offsets = [0, 0, 1], sizes = [2, 20, 17], strides = [1, 1, 1]} : vector<2x20x20xf32> to vector<2x20x17xf32>
    %c0_17 = arith.constant 0 : index
    %c1_18 = arith.constant 1 : index
    %28 = memref.load %arg1[%c0_17, %c1_18] : memref<4x4xf32, #tpu.memory_space<smem>>
    %29 = vector.extract_strided_slice %27 {offsets = [0, 0, 0], sizes = [2, 17, 17], strides = [1, 1, 1]} : vector<2x20x17xf32> to vector<2x17x17xf32>
    %30 = vector.broadcast %28 : f32 to vector<2x17x17xf32>
    %31 = arith.mulf %30, %29 : vector<2x17x17xf32>
    %32 = arith.addf %26, %31 : vector<2x17x17xf32>
    %c1_19 = arith.constant 1 : index
    %c1_20 = arith.constant 1 : index
    %33 = memref.load %arg1[%c1_19, %c1_20] : memref<4x4xf32, #tpu.memory_space<smem>>
    %34 = vector.extract_strided_slice %27 {offsets = [0, 1, 0], sizes = [2, 17, 17], strides = [1, 1, 1]} : vector<2x20x17xf32> to vector<2x17x17xf32>
    %35 = vector.broadcast %33 : f32 to vector<2x17x17xf32>
    %36 = arith.mulf %35, %34 : vector<2x17x17xf32>
    %37 = arith.addf %32, %36 : vector<2x17x17xf32>
    %c2_21 = arith.constant 2 : index
    %c1_22 = arith.constant 1 : index
    %38 = memref.load %arg1[%c2_21, %c1_22] : memref<4x4xf32, #tpu.memory_space<smem>>
    %39 = vector.extract_strided_slice %27 {offsets = [0, 2, 0], sizes = [2, 17, 17], strides = [1, 1, 1]} : vector<2x20x17xf32> to vector<2x17x17xf32>
    %40 = vector.broadcast %38 : f32 to vector<2x17x17xf32>
    %41 = arith.mulf %40, %39 : vector<2x17x17xf32>
    %42 = arith.addf %37, %41 : vector<2x17x17xf32>
    %c3_23 = arith.constant 3 : index
    %c1_24 = arith.constant 1 : index
    %43 = memref.load %arg1[%c3_23, %c1_24] : memref<4x4xf32, #tpu.memory_space<smem>>
    %44 = vector.extract_strided_slice %27 {offsets = [0, 3, 0], sizes = [2, 17, 17], strides = [1, 1, 1]} : vector<2x20x17xf32> to vector<2x17x17xf32>
    %45 = vector.broadcast %43 : f32 to vector<2x17x17xf32>
    %46 = arith.mulf %45, %44 : vector<2x17x17xf32>
    %47 = arith.addf %42, %46 : vector<2x17x17xf32>
    %48 = vector.extract_strided_slice %4 {offsets = [0, 0, 2], sizes = [2, 20, 17], strides = [1, 1, 1]} : vector<2x20x20xf32> to vector<2x20x17xf32>
    %c0_25 = arith.constant 0 : index
    %c2_26 = arith.constant 2 : index
    %49 = memref.load %arg1[%c0_25, %c2_26] : memref<4x4xf32, #tpu.memory_space<smem>>
    %50 = vector.extract_strided_slice %48 {offsets = [0, 0, 0], sizes = [2, 17, 17], strides = [1, 1, 1]} : vector<2x20x17xf32> to vector<2x17x17xf32>
    %51 = vector.broadcast %49 : f32 to vector<2x17x17xf32>
    %52 = arith.mulf %51, %50 : vector<2x17x17xf32>
    %53 = arith.addf %47, %52 : vector<2x17x17xf32>
    %c1_27 = arith.constant 1 : index
    %c2_28 = arith.constant 2 : index
    %54 = memref.load %arg1[%c1_27, %c2_28] : memref<4x4xf32, #tpu.memory_space<smem>>
    %55 = vector.extract_strided_slice %48 {offsets = [0, 1, 0], sizes = [2, 17, 17], strides = [1, 1, 1]} : vector<2x20x17xf32> to vector<2x17x17xf32>
    %56 = vector.broadcast %54 : f32 to vector<2x17x17xf32>
    %57 = arith.mulf %56, %55 : vector<2x17x17xf32>
    %58 = arith.addf %53, %57 : vector<2x17x17xf32>
    %c2_29 = arith.constant 2 : index
    %c2_30 = arith.constant 2 : index
    %59 = memref.load %arg1[%c2_29, %c2_30] : memref<4x4xf32, #tpu.memory_space<smem>>
    %60 = vector.extract_strided_slice %48 {offsets = [0, 2, 0], sizes = [2, 17, 17], strides = [1, 1, 1]} : vector<2x20x17xf32> to vector<2x17x17xf32>
    %61 = vector.broadcast %59 : f32 to vector<2x17x17xf32>
    %62 = arith.mulf %61, %60 : vector<2x17x17xf32>
    %63 = arith.addf %58, %62 : vector<2x17x17xf32>
    %c3_31 = arith.constant 3 : index
    %c2_32 = arith.constant 2 : index
    %64 = memref.load %arg1[%c3_31, %c2_32] : memref<4x4xf32, #tpu.memory_space<smem>>
    %65 = vector.extract_strided_slice %48 {offsets = [0, 3, 0], sizes = [2, 17, 17], strides = [1, 1, 1]} : vector<2x20x17xf32> to vector<2x17x17xf32>
    %66 = vector.broadcast %64 : f32 to vector<2x17x17xf32>
    %67 = arith.mulf %66, %65 : vector<2x17x17xf32>
    %68 = arith.addf %63, %67 : vector<2x17x17xf32>
    %69 = vector.extract_strided_slice %4 {offsets = [0, 0, 3], sizes = [2, 20, 17], strides = [1, 1, 1]} : vector<2x20x20xf32> to vector<2x20x17xf32>
    %c0_33 = arith.constant 0 : index
    %c3_34 = arith.constant 3 : index
    %70 = memref.load %arg1[%c0_33, %c3_34] : memref<4x4xf32, #tpu.memory_space<smem>>
    %71 = vector.extract_strided_slice %69 {offsets = [0, 0, 0], sizes = [2, 17, 17], strides = [1, 1, 1]} : vector<2x20x17xf32> to vector<2x17x17xf32>
    %72 = vector.broadcast %70 : f32 to vector<2x17x17xf32>
    %73 = arith.mulf %72, %71 : vector<2x17x17xf32>
    %74 = arith.addf %68, %73 : vector<2x17x17xf32>
    %c1_35 = arith.constant 1 : index
    %c3_36 = arith.constant 3 : index
    %75 = memref.load %arg1[%c1_35, %c3_36] : memref<4x4xf32, #tpu.memory_space<smem>>
    %76 = vector.extract_strided_slice %69 {offsets = [0, 1, 0], sizes = [2, 17, 17], strides = [1, 1, 1]} : vector<2x20x17xf32> to vector<2x17x17xf32>
    %77 = vector.broadcast %75 : f32 to vector<2x17x17xf32>
    %78 = arith.mulf %77, %76 : vector<2x17x17xf32>
    %79 = arith.addf %74, %78 : vector<2x17x17xf32>
    %c2_37 = arith.constant 2 : index
    %c3_38 = arith.constant 3 : index
    %80 = memref.load %arg1[%c2_37, %c3_38] : memref<4x4xf32, #tpu.memory_space<smem>>
    %81 = vector.extract_strided_slice %69 {offsets = [0, 2, 0], sizes = [2, 17, 17], strides = [1, 1, 1]} : vector<2x20x17xf32> to vector<2x17x17xf32>
    %82 = vector.broadcast %80 : f32 to vector<2x17x17xf32>
    %83 = arith.mulf %82, %81 : vector<2x17x17xf32>
    %84 = arith.addf %79, %83 : vector<2x17x17xf32>
    %c3_39 = arith.constant 3 : index
    %c3_40 = arith.constant 3 : index
    %85 = memref.load %arg1[%c3_39, %c3_40] : memref<4x4xf32, #tpu.memory_space<smem>>
    %86 = vector.extract_strided_slice %69 {offsets = [0, 3, 0], sizes = [2, 17, 17], strides = [1, 1, 1]} : vector<2x20x17xf32> to vector<2x17x17xf32>
    %87 = vector.broadcast %85 : f32 to vector<2x17x17xf32>
    %88 = arith.mulf %87, %86 : vector<2x17x17xf32>
    %89 = arith.addf %84, %88 : vector<2x17x17xf32>
    %c0_41 = arith.constant 0 : index
    %90 = memref.load %arg2[%c0_41] : memref<1xf32, #tpu.memory_space<smem>>
    %91 = vector.broadcast %90 : f32 to vector<2x17x17xf32>
    %92 = arith.addf %89, %91 : vector<2x17x17xf32>
    %cst_42 = arith.constant 0.000000e+00 : f32
    %93 = vector.broadcast %cst_42 : f32 to vector<2x17x17xf32>
    %94 = arith.maximumf %92, %93 : vector<2x17x17xf32>
    %95 = vector.extract_strided_slice %94 {offsets = [0, 0, 0], sizes = [2, 16, 16], strides = [1, 1, 1]} : vector<2x17x17xf32> to vector<2x16x16xf32>
    %96 = vector.extract_strided_slice %94 {offsets = [0, 1, 0], sizes = [2, 16, 16], strides = [1, 1, 1]} : vector<2x17x17xf32> to vector<2x16x16xf32>
    %97 = arith.maximumf %95, %96 : vector<2x16x16xf32>
    %98 = vector.extract_strided_slice %94 {offsets = [0, 0, 1], sizes = [2, 16, 16], strides = [1, 1, 1]} : vector<2x17x17xf32> to vector<2x16x16xf32>
    %99 = vector.extract_strided_slice %94 {offsets = [0, 1, 1], sizes = [2, 16, 16], strides = [1, 1, 1]} : vector<2x17x17xf32> to vector<2x16x16xf32>
    %100 = arith.maximumf %98, %99 : vector<2x16x16xf32>
    %101 = arith.maximumf %97, %100 : vector<2x16x16xf32>
    %102 = vector.extract_strided_slice %101 {offsets = [0, 0, 0], sizes = [2, 16, 1], strides = [1, 1, 1]} : vector<2x16x16xf32> to vector<2x16x1xf32>
    %c0_43 = arith.constant 0 : index
    %c0_44 = arith.constant 0 : index
    %c0_45 = arith.constant 0 : index
    %103 = vector.load %arg7[%c0_43, %c0_44, %c0_45] : memref<2x16x8xf32, #tpu.memory_space<vmem>>, vector<2x16x1xf32>
    tpu.vector_store %arg7[%c0_43, %c0_44, %c0_45], %102 {strides = array<i32>} : memref<2x16x8xf32, #tpu.memory_space<vmem>>, vector<2x16x1xf32>,
    %104 = vector.extract_strided_slice %101 {offsets = [0, 0, 2], sizes = [2, 16, 1], strides = [1, 1, 1]} : vector<2x16x16xf32> to vector<2x16x1xf32>
    %c0_46 = arith.constant 0 : index
    %c0_47 = arith.constant 0 : index
    %c1_48 = arith.constant 1 : index
    %105 = vector.load %arg7[%c0_46, %c0_47, %c1_48] : memref<2x16x8xf32, #tpu.memory_space<vmem>>, vector<2x16x1xf32>
    tpu.vector_store %arg7[%c0_46, %c0_47, %c1_48], %104 {strides = array<i32>} : memref<2x16x8xf32, #tpu.memory_space<vmem>>, vector<2x16x1xf32>,
    %106 = vector.extract_strided_slice %101 {offsets = [0, 0, 4], sizes = [2, 16, 1], strides = [1, 1, 1]} : vector<2x16x16xf32> to vector<2x16x1xf32>
    %c0_49 = arith.constant 0 : index
    %c0_50 = arith.constant 0 : index
    %c2_51 = arith.constant 2 : index
    %107 = vector.load %arg7[%c0_49, %c0_50, %c2_51] : memref<2x16x8xf32, #tpu.memory_space<vmem>>, vector<2x16x1xf32>
    tpu.vector_store %arg7[%c0_49, %c0_50, %c2_51], %106 {strides = array<i32>} : memref<2x16x8xf32, #tpu.memory_space<vmem>>, vector<2x16x1xf32>,
    %108 = vector.extract_strided_slice %101 {offsets = [0, 0, 6], sizes = [2, 16, 1], strides = [1, 1, 1]} : vector<2x16x16xf32> to vector<2x16x1xf32>
    %c0_52 = arith.constant 0 : index
    %c0_53 = arith.constant 0 : index
    %c3_54 = arith.constant 3 : index
    %109 = vector.load %arg7[%c0_52, %c0_53, %c3_54] : memref<2x16x8xf32, #tpu.memory_space<vmem>>, vector<2x16x1xf32>
    tpu.vector_store %arg7[%c0_52, %c0_53, %c3_54], %108 {strides = array<i32>} : memref<2x16x8xf32, #tpu.memory_space<vmem>>, vector<2x16x1xf32>,
    %110 = vector.extract_strided_slice %101 {offsets = [0, 0, 8], sizes = [2, 16, 1], strides = [1, 1, 1]} : vector<2x16x16xf32> to vector<2x16x1xf32>
    %c0_55 = arith.constant 0 : index
    %c0_56 = arith.constant 0 : index
    %c4 = arith.constant 4 : index
    %111 = vector.load %arg7[%c0_55, %c0_56, %c4] : memref<2x16x8xf32, #tpu.memory_space<vmem>>, vector<2x16x1xf32>
    tpu.vector_store %arg7[%c0_55, %c0_56, %c4], %110 {strides = array<i32>} : memref<2x16x8xf32, #tpu.memory_space<vmem>>, vector<2x16x1xf32>,
    %112 = vector.extract_strided_slice %101 {offsets = [0, 0, 10], sizes = [2, 16, 1], strides = [1, 1, 1]} : vector<2x16x16xf32> to vector<2x16x1xf32>
    %c0_57 = arith.constant 0 : index
    %c0_58 = arith.constant 0 : index
    %c5 = arith.constant 5 : index
    %113 = vector.load %arg7[%c0_57, %c0_58, %c5] : memref<2x16x8xf32, #tpu.memory_space<vmem>>, vector<2x16x1xf32>
    tpu.vector_store %arg7[%c0_57, %c0_58, %c5], %112 {strides = array<i32>} : memref<2x16x8xf32, #tpu.memory_space<vmem>>, vector<2x16x1xf32>,
    %114 = vector.extract_strided_slice %101 {offsets = [0, 0, 12], sizes = [2, 16, 1], strides = [1, 1, 1]} : vector<2x16x16xf32> to vector<2x16x1xf32>
    %c0_59 = arith.constant 0 : index
    %c0_60 = arith.constant 0 : index
    %c6 = arith.constant 6 : index
    %115 = vector.load %arg7[%c0_59, %c0_60, %c6] : memref<2x16x8xf32, #tpu.memory_space<vmem>>, vector<2x16x1xf32>
    tpu.vector_store %arg7[%c0_59, %c0_60, %c6], %114 {strides = array<i32>} : memref<2x16x8xf32, #tpu.memory_space<vmem>>, vector<2x16x1xf32>,
    %116 = vector.extract_strided_slice %101 {offsets = [0, 0, 14], sizes = [2, 16, 1], strides = [1, 1, 1]} : vector<2x16x16xf32> to vector<2x16x1xf32>
    %c0_61 = arith.constant 0 : index
    %c0_62 = arith.constant 0 : index
    %c7 = arith.constant 7 : index
    %117 = vector.load %arg7[%c0_61, %c0_62, %c7] : memref<2x16x8xf32, #tpu.memory_space<vmem>>, vector<2x16x1xf32>
    tpu.vector_store %arg7[%c0_61, %c0_62, %c7], %116 {strides = array<i32>} : memref<2x16x8xf32, #tpu.memory_space<vmem>>, vector<2x16x1xf32>,
    %cst_63 = arith.constant 0.000000e+00 : f32
    %118 = vector.broadcast %cst_63 : f32 to vector<2x12x12xf32>
    %c0_64 = arith.constant 0 : index
    %c0_65 = arith.constant 0 : index
    %c0_66 = arith.constant 0 : index
    %119 = vector.load %arg8[%c0_64, %c0_65, %c0_66] : memref<2x12x12xf32, #tpu.memory_space<vmem>>, vector<2x12x12xf32>
    tpu.vector_store %arg8[%c0_64, %c0_65, %c0_66], %118 {strides = array<i32>} : memref<2x12x12xf32, #tpu.memory_space<vmem>>, vector<2x12x12xf32>,
    %c0_67 = arith.constant 0 : index
    %c0_68 = arith.constant 0 : index
    %c0_69 = arith.constant 0 : index
    %120 = vector.load %arg7[%c0_67, %c0_68, %c0_69] : memref<2x16x8xf32, #tpu.memory_space<vmem>>, vector<2x1x8xf32>
    %c0_70 = arith.constant 0 : index
    %c2_71 = arith.constant 2 : index
    %c2_72 = arith.constant 2 : index
    %121 = vector.load %arg8[%c0_70, %c2_71, %c2_72] : memref<2x12x12xf32, #tpu.memory_space<vmem>>, vector<2x1x8xf32>
    tpu.vector_store %arg8[%c0_70, %c2_71, %c2_72], %120 {strides = array<i32>} : memref<2x12x12xf32, #tpu.memory_space<vmem>>, vector<2x1x8xf32>,
    %c0_73 = arith.constant 0 : index
    %c2_74 = arith.constant 2 : index
    %c0_75 = arith.constant 0 : index
    %122 = vector.load %arg7[%c0_73, %c2_74, %c0_75] : memref<2x16x8xf32, #tpu.memory_space<vmem>>, vector<2x1x8xf32>
    %c0_76 = arith.constant 0 : index
    %c3_77 = arith.constant 3 : index
    %c2_78 = arith.constant 2 : index
    %123 = vector.load %arg8[%c0_76, %c3_77, %c2_78] : memref<2x12x12xf32, #tpu.memory_space<vmem>>, vector<2x1x8xf32>
    tpu.vector_store %arg8[%c0_76, %c3_77, %c2_78], %122 {strides = array<i32>} : memref<2x12x12xf32, #tpu.memory_space<vmem>>, vector<2x1x8xf32>,
    %c0_79 = arith.constant 0 : index
    %c4_80 = arith.constant 4 : index
    %c0_81 = arith.constant 0 : index
    %124 = vector.load %arg7[%c0_79, %c4_80, %c0_81] : memref<2x16x8xf32, #tpu.memory_space<vmem>>, vector<2x1x8xf32>
    %c0_82 = arith.constant 0 : index
    %c4_83 = arith.constant 4 : index
    %c2_84 = arith.constant 2 : index
    %125 = vector.load %arg8[%c0_82, %c4_83, %c2_84] : memref<2x12x12xf32, #tpu.memory_space<vmem>>, vector<2x1x8xf32>
    tpu.vector_store %arg8[%c0_82, %c4_83, %c2_84], %124 {strides = array<i32>} : memref<2x12x12xf32, #tpu.memory_space<vmem>>, vector<2x1x8xf32>,
    %c0_85 = arith.constant 0 : index
    %c6_86 = arith.constant 6 : index
    %c0_87 = arith.constant 0 : index
    %126 = vector.load %arg7[%c0_85, %c6_86, %c0_87] : memref<2x16x8xf32, #tpu.memory_space<vmem>>, vector<2x1x8xf32>
    %c0_88 = arith.constant 0 : index
    %c5_89 = arith.constant 5 : index
    %c2_90 = arith.constant 2 : index
    %127 = vector.load %arg8[%c0_88, %c5_89, %c2_90] : memref<2x12x12xf32, #tpu.memory_space<vmem>>, vector<2x1x8xf32>
    tpu.vector_store %arg8[%c0_88, %c5_89, %c2_90], %126 {strides = array<i32>} : memref<2x12x12xf32, #tpu.memory_space<vmem>>, vector<2x1x8xf32>,
    %c0_91 = arith.constant 0 : index
    %c8 = arith.constant 8 : index
    %c0_92 = arith.constant 0 : index
    %128 = vector.load %arg7[%c0_91, %c8, %c0_92] : memref<2x16x8xf32, #tpu.memory_space<vmem>>, vector<2x1x8xf32>
    %c0_93 = arith.constant 0 : index
    %c6_94 = arith.constant 6 : index
    %c2_95 = arith.constant 2 : index
    %129 = vector.load %arg8[%c0_93, %c6_94, %c2_95] : memref<2x12x12xf32, #tpu.memory_space<vmem>>, vector<2x1x8xf32>
    tpu.vector_store %arg8[%c0_93, %c6_94, %c2_95], %128 {strides = array<i32>} : memref<2x12x12xf32, #tpu.memory_space<vmem>>, vector<2x1x8xf32>,
    %c0_96 = arith.constant 0 : index
    %c10 = arith.constant 10 : index
    %c0_97 = arith.constant 0 : index
    %130 = vector.load %arg7[%c0_96, %c10, %c0_97] : memref<2x16x8xf32, #tpu.memory_space<vmem>>, vector<2x1x8xf32>
    %c0_98 = arith.constant 0 : index
    %c7_99 = arith.constant 7 : index
    %c2_100 = arith.constant 2 : index
    %131 = vector.load %arg8[%c0_98, %c7_99, %c2_100] : memref<2x12x12xf32, #tpu.memory_space<vmem>>, vector<2x1x8xf32>
    tpu.vector_store %arg8[%c0_98, %c7_99, %c2_100], %130 {strides = array<i32>} : memref<2x12x12xf32, #tpu.memory_space<vmem>>, vector<2x1x8xf32>,
    %c0_101 = arith.constant 0 : index
    %c12 = arith.constant 12 : index
    %c0_102 = arith.constant 0 : index
    %132 = vector.load %arg7[%c0_101, %c12, %c0_102] : memref<2x16x8xf32, #tpu.memory_space<vmem>>, vector<2x1x8xf32>
    %c0_103 = arith.constant 0 : index
    %c8_104 = arith.constant 8 : index
    %c2_105 = arith.constant 2 : index
    %133 = vector.load %arg8[%c0_103, %c8_104, %c2_105] : memref<2x12x12xf32, #tpu.memory_space<vmem>>, vector<2x1x8xf32>
    tpu.vector_store %arg8[%c0_103, %c8_104, %c2_105], %132 {strides = array<i32>} : memref<2x12x12xf32, #tpu.memory_space<vmem>>, vector<2x1x8xf32>,
    %c0_106 = arith.constant 0 : index
    %c14 = arith.constant 14 : index
    %c0_107 = arith.constant 0 : index
    %134 = vector.load %arg7[%c0_106, %c14, %c0_107] : memref<2x16x8xf32, #tpu.memory_space<vmem>>, vector<2x1x8xf32>
    %c0_108 = arith.constant 0 : index
    %c9 = arith.constant 9 : index
    %c2_109 = arith.constant 2 : index
    %135 = vector.load %arg8[%c0_108, %c9, %c2_109] : memref<2x12x12xf32, #tpu.memory_space<vmem>>, vector<2x1x8xf32>
    tpu.vector_store %arg8[%c0_108, %c9, %c2_109], %134 {strides = array<i32>} : memref<2x12x12xf32, #tpu.memory_space<vmem>>, vector<2x1x8xf32>,
    %c0_110 = arith.constant 0 : index
    %c0_111 = arith.constant 0 : index
    %c0_112 = arith.constant 0 : index
    %136 = vector.load %arg8[%c0_110, %c0_111, %c0_112] : memref<2x12x12xf32, #tpu.memory_space<vmem>>, vector<2x12x12xf32>
    %cst_113 = arith.constant 0.000000e+00 : f32
    %137 = vector.broadcast %cst_113 : f32 to vector<2x9x9xf32>
    %138 = vector.extract_strided_slice %136 {offsets = [0, 0, 0], sizes = [2, 12, 9], strides = [1, 1, 1]} : vector<2x12x12xf32> to vector<2x12x9xf32>
    %c0_114 = arith.constant 0 : index
    %c0_115 = arith.constant 0 : index
    %139 = memref.load %arg3[%c0_114, %c0_115] : memref<4x4xf32, #tpu.memory_space<smem>>
    %140 = vector.extract_strided_slice %138 {offsets = [0, 0, 0], sizes = [2, 9, 9], strides = [1, 1, 1]} : vector<2x12x9xf32> to vector<2x9x9xf32>
    %141 = vector.broadcast %139 : f32 to vector<2x9x9xf32>
    %142 = arith.mulf %141, %140 : vector<2x9x9xf32>
    %143 = arith.addf %137, %142 : vector<2x9x9xf32>
    %c1_116 = arith.constant 1 : index
    %c0_117 = arith.constant 0 : index
    %144 = memref.load %arg3[%c1_116, %c0_117] : memref<4x4xf32, #tpu.memory_space<smem>>
    %145 = vector.extract_strided_slice %138 {offsets = [0, 1, 0], sizes = [2, 9, 9], strides = [1, 1, 1]} : vector<2x12x9xf32> to vector<2x9x9xf32>
    %146 = vector.broadcast %144 : f32 to vector<2x9x9xf32>
    %147 = arith.mulf %146, %145 : vector<2x9x9xf32>
    %148 = arith.addf %143, %147 : vector<2x9x9xf32>
    %c2_118 = arith.constant 2 : index
    %c0_119 = arith.constant 0 : index
    %149 = memref.load %arg3[%c2_118, %c0_119] : memref<4x4xf32, #tpu.memory_space<smem>>
    %150 = vector.extract_strided_slice %138 {offsets = [0, 2, 0], sizes = [2, 9, 9], strides = [1, 1, 1]} : vector<2x12x9xf32> to vector<2x9x9xf32>
    %151 = vector.broadcast %149 : f32 to vector<2x9x9xf32>
    %152 = arith.mulf %151, %150 : vector<2x9x9xf32>
    %153 = arith.addf %148, %152 : vector<2x9x9xf32>
    %c3_120 = arith.constant 3 : index
    %c0_121 = arith.constant 0 : index
    %154 = memref.load %arg3[%c3_120, %c0_121] : memref<4x4xf32, #tpu.memory_space<smem>>
    %155 = vector.extract_strided_slice %138 {offsets = [0, 3, 0], sizes = [2, 9, 9], strides = [1, 1, 1]} : vector<2x12x9xf32> to vector<2x9x9xf32>
    %156 = vector.broadcast %154 : f32 to vector<2x9x9xf32>
    %157 = arith.mulf %156, %155 : vector<2x9x9xf32>
    %158 = arith.addf %153, %157 : vector<2x9x9xf32>
    %159 = vector.extract_strided_slice %136 {offsets = [0, 0, 1], sizes = [2, 12, 9], strides = [1, 1, 1]} : vector<2x12x12xf32> to vector<2x12x9xf32>
    %c0_122 = arith.constant 0 : index
    %c1_123 = arith.constant 1 : index
    %160 = memref.load %arg3[%c0_122, %c1_123] : memref<4x4xf32, #tpu.memory_space<smem>>
    %161 = vector.extract_strided_slice %159 {offsets = [0, 0, 0], sizes = [2, 9, 9], strides = [1, 1, 1]} : vector<2x12x9xf32> to vector<2x9x9xf32>
    %162 = vector.broadcast %160 : f32 to vector<2x9x9xf32>
    %163 = arith.mulf %162, %161 : vector<2x9x9xf32>
    %164 = arith.addf %158, %163 : vector<2x9x9xf32>
    %c1_124 = arith.constant 1 : index
    %c1_125 = arith.constant 1 : index
    %165 = memref.load %arg3[%c1_124, %c1_125] : memref<4x4xf32, #tpu.memory_space<smem>>
    %166 = vector.extract_strided_slice %159 {offsets = [0, 1, 0], sizes = [2, 9, 9], strides = [1, 1, 1]} : vector<2x12x9xf32> to vector<2x9x9xf32>
    %167 = vector.broadcast %165 : f32 to vector<2x9x9xf32>
    %168 = arith.mulf %167, %166 : vector<2x9x9xf32>
    %169 = arith.addf %164, %168 : vector<2x9x9xf32>
    %c2_126 = arith.constant 2 : index
    %c1_127 = arith.constant 1 : index
    %170 = memref.load %arg3[%c2_126, %c1_127] : memref<4x4xf32, #tpu.memory_space<smem>>
    %171 = vector.extract_strided_slice %159 {offsets = [0, 2, 0], sizes = [2, 9, 9], strides = [1, 1, 1]} : vector<2x12x9xf32> to vector<2x9x9xf32>
    %172 = vector.broadcast %170 : f32 to vector<2x9x9xf32>
    %173 = arith.mulf %172, %171 : vector<2x9x9xf32>
    %174 = arith.addf %169, %173 : vector<2x9x9xf32>
    %c3_128 = arith.constant 3 : index
    %c1_129 = arith.constant 1 : index
    %175 = memref.load %arg3[%c3_128, %c1_129] : memref<4x4xf32, #tpu.memory_space<smem>>
    %176 = vector.extract_strided_slice %159 {offsets = [0, 3, 0], sizes = [2, 9, 9], strides = [1, 1, 1]} : vector<2x12x9xf32> to vector<2x9x9xf32>
    %177 = vector.broadcast %175 : f32 to vector<2x9x9xf32>
    %178 = arith.mulf %177, %176 : vector<2x9x9xf32>
    %179 = arith.addf %174, %178 : vector<2x9x9xf32>
    %180 = vector.extract_strided_slice %136 {offsets = [0, 0, 2], sizes = [2, 12, 9], strides = [1, 1, 1]} : vector<2x12x12xf32> to vector<2x12x9xf32>
    %c0_130 = arith.constant 0 : index
    %c2_131 = arith.constant 2 : index
    %181 = memref.load %arg3[%c0_130, %c2_131] : memref<4x4xf32, #tpu.memory_space<smem>>
    %182 = vector.extract_strided_slice %180 {offsets = [0, 0, 0], sizes = [2, 9, 9], strides = [1, 1, 1]} : vector<2x12x9xf32> to vector<2x9x9xf32>
    %183 = vector.broadcast %181 : f32 to vector<2x9x9xf32>
    %184 = arith.mulf %183, %182 : vector<2x9x9xf32>
    %185 = arith.addf %179, %184 : vector<2x9x9xf32>
    %c1_132 = arith.constant 1 : index
    %c2_133 = arith.constant 2 : index
    %186 = memref.load %arg3[%c1_132, %c2_133] : memref<4x4xf32, #tpu.memory_space<smem>>
    %187 = vector.extract_strided_slice %180 {offsets = [0, 1, 0], sizes = [2, 9, 9], strides = [1, 1, 1]} : vector<2x12x9xf32> to vector<2x9x9xf32>
    %188 = vector.broadcast %186 : f32 to vector<2x9x9xf32>
    %189 = arith.mulf %188, %187 : vector<2x9x9xf32>
    %190 = arith.addf %185, %189 : vector<2x9x9xf32>
    %c2_134 = arith.constant 2 : index
    %c2_135 = arith.constant 2 : index
    %191 = memref.load %arg3[%c2_134, %c2_135] : memref<4x4xf32, #tpu.memory_space<smem>>
    %192 = vector.extract_strided_slice %180 {offsets = [0, 2, 0], sizes = [2, 9, 9], strides = [1, 1, 1]} : vector<2x12x9xf32> to vector<2x9x9xf32>
    %193 = vector.broadcast %191 : f32 to vector<2x9x9xf32>
    %194 = arith.mulf %193, %192 : vector<2x9x9xf32>
    %195 = arith.addf %190, %194 : vector<2x9x9xf32>
    %c3_136 = arith.constant 3 : index
    %c2_137 = arith.constant 2 : index
    %196 = memref.load %arg3[%c3_136, %c2_137] : memref<4x4xf32, #tpu.memory_space<smem>>
    %197 = vector.extract_strided_slice %180 {offsets = [0, 3, 0], sizes = [2, 9, 9], strides = [1, 1, 1]} : vector<2x12x9xf32> to vector<2x9x9xf32>
    %198 = vector.broadcast %196 : f32 to vector<2x9x9xf32>
    %199 = arith.mulf %198, %197 : vector<2x9x9xf32>
    %200 = arith.addf %195, %199 : vector<2x9x9xf32>
    %201 = vector.extract_strided_slice %136 {offsets = [0, 0, 3], sizes = [2, 12, 9], strides = [1, 1, 1]} : vector<2x12x12xf32> to vector<2x12x9xf32>
    %c0_138 = arith.constant 0 : index
    %c3_139 = arith.constant 3 : index
    %202 = memref.load %arg3[%c0_138, %c3_139] : memref<4x4xf32, #tpu.memory_space<smem>>
    %203 = vector.extract_strided_slice %201 {offsets = [0, 0, 0], sizes = [2, 9, 9], strides = [1, 1, 1]} : vector<2x12x9xf32> to vector<2x9x9xf32>
    %204 = vector.broadcast %202 : f32 to vector<2x9x9xf32>
    %205 = arith.mulf %204, %203 : vector<2x9x9xf32>
    %206 = arith.addf %200, %205 : vector<2x9x9xf32>
    %c1_140 = arith.constant 1 : index
    %c3_141 = arith.constant 3 : index
    %207 = memref.load %arg3[%c1_140, %c3_141] : memref<4x4xf32, #tpu.memory_space<smem>>
    %208 = vector.extract_strided_slice %201 {offsets = [0, 1, 0], sizes = [2, 9, 9], strides = [1, 1, 1]} : vector<2x12x9xf32> to vector<2x9x9xf32>
    %209 = vector.broadcast %207 : f32 to vector<2x9x9xf32>
    %210 = arith.mulf %209, %208 : vector<2x9x9xf32>
    %211 = arith.addf %206, %210 : vector<2x9x9xf32>
    %c2_142 = arith.constant 2 : index
    %c3_143 = arith.constant 3 : index
    %212 = memref.load %arg3[%c2_142, %c3_143] : memref<4x4xf32, #tpu.memory_space<smem>>
    %213 = vector.extract_strided_slice %201 {offsets = [0, 2, 0], sizes = [2, 9, 9], strides = [1, 1, 1]} : vector<2x12x9xf32> to vector<2x9x9xf32>
    %214 = vector.broadcast %212 : f32 to vector<2x9x9xf32>
    %215 = arith.mulf %214, %213 : vector<2x9x9xf32>
    %216 = arith.addf %211, %215 : vector<2x9x9xf32>
    %c3_144 = arith.constant 3 : index
    %c3_145 = arith.constant 3 : index
    %217 = memref.load %arg3[%c3_144, %c3_145] : memref<4x4xf32, #tpu.memory_space<smem>>
    %218 = vector.extract_strided_slice %201 {offsets = [0, 3, 0], sizes = [2, 9, 9], strides = [1, 1, 1]} : vector<2x12x9xf32> to vector<2x9x9xf32>
    %219 = vector.broadcast %217 : f32 to vector<2x9x9xf32>
    %220 = arith.mulf %219, %218 : vector<2x9x9xf32>
    %221 = arith.addf %216, %220 : vector<2x9x9xf32>
    %c0_146 = arith.constant 0 : index
    %222 = memref.load %arg4[%c0_146] : memref<1xf32, #tpu.memory_space<smem>>
    %223 = vector.broadcast %222 : f32 to vector<2x9x9xf32>
    %224 = arith.addf %221, %223 : vector<2x9x9xf32>
    %cst_147 = arith.constant 0.000000e+00 : f32
    %225 = vector.broadcast %cst_147 : f32 to vector<2x9x9xf32>
    %226 = arith.maximumf %224, %225 : vector<2x9x9xf32>
    %227 = vector.extract_strided_slice %226 {offsets = [0, 0, 0], sizes = [2, 8, 8], strides = [1, 1, 1]} : vector<2x9x9xf32> to vector<2x8x8xf32>
    %228 = vector.extract_strided_slice %226 {offsets = [0, 1, 0], sizes = [2, 8, 8], strides = [1, 1, 1]} : vector<2x9x9xf32> to vector<2x8x8xf32>
    %229 = arith.maximumf %227, %228 : vector<2x8x8xf32>
    %230 = vector.extract_strided_slice %226 {offsets = [0, 0, 1], sizes = [2, 8, 8], strides = [1, 1, 1]} : vector<2x9x9xf32> to vector<2x8x8xf32>
    %231 = vector.extract_strided_slice %226 {offsets = [0, 1, 1], sizes = [2, 8, 8], strides = [1, 1, 1]} : vector<2x9x9xf32> to vector<2x8x8xf32>
    %232 = arith.maximumf %230, %231 : vector<2x8x8xf32>
    %233 = arith.maximumf %229, %232 : vector<2x8x8xf32>
    %234 = vector.extract_strided_slice %233 {offsets = [0, 0, 0], sizes = [2, 8, 1], strides = [1, 1, 1]} : vector<2x8x8xf32> to vector<2x8x1xf32>
    %c0_148 = arith.constant 0 : index
    %c0_149 = arith.constant 0 : index
    %c0_150 = arith.constant 0 : index
    %235 = vector.load %arg9[%c0_148, %c0_149, %c0_150] : memref<2x8x4xf32, #tpu.memory_space<vmem>>, vector<2x8x1xf32>
    tpu.vector_store %arg9[%c0_148, %c0_149, %c0_150], %234 {strides = array<i32>} : memref<2x8x4xf32, #tpu.memory_space<vmem>>, vector<2x8x1xf32>,
    %236 = vector.extract_strided_slice %233 {offsets = [0, 0, 2], sizes = [2, 8, 1], strides = [1, 1, 1]} : vector<2x8x8xf32> to vector<2x8x1xf32>
    %c0_151 = arith.constant 0 : index
    %c0_152 = arith.constant 0 : index
    %c1_153 = arith.constant 1 : index
    %237 = vector.load %arg9[%c0_151, %c0_152, %c1_153] : memref<2x8x4xf32, #tpu.memory_space<vmem>>, vector<2x8x1xf32>
    tpu.vector_store %arg9[%c0_151, %c0_152, %c1_153], %236 {strides = array<i32>} : memref<2x8x4xf32, #tpu.memory_space<vmem>>, vector<2x8x1xf32>,
    %238 = vector.extract_strided_slice %233 {offsets = [0, 0, 4], sizes = [2, 8, 1], strides = [1, 1, 1]} : vector<2x8x8xf32> to vector<2x8x1xf32>
    %c0_154 = arith.constant 0 : index
    %c0_155 = arith.constant 0 : index
    %c2_156 = arith.constant 2 : index
    %239 = vector.load %arg9[%c0_154, %c0_155, %c2_156] : memref<2x8x4xf32, #tpu.memory_space<vmem>>, vector<2x8x1xf32>
    tpu.vector_store %arg9[%c0_154, %c0_155, %c2_156], %238 {strides = array<i32>} : memref<2x8x4xf32, #tpu.memory_space<vmem>>, vector<2x8x1xf32>,
    %240 = vector.extract_strided_slice %233 {offsets = [0, 0, 6], sizes = [2, 8, 1], strides = [1, 1, 1]} : vector<2x8x8xf32> to vector<2x8x1xf32>
    %c0_157 = arith.constant 0 : index
    %c0_158 = arith.constant 0 : index
    %c3_159 = arith.constant 3 : index
    %241 = vector.load %arg9[%c0_157, %c0_158, %c3_159] : memref<2x8x4xf32, #tpu.memory_space<vmem>>, vector<2x8x1xf32>
    tpu.vector_store %arg9[%c0_157, %c0_158, %c3_159], %240 {strides = array<i32>} : memref<2x8x4xf32, #tpu.memory_space<vmem>>, vector<2x8x1xf32>,
    %c0_160 = arith.constant 0 : index
    %c0_161 = arith.constant 0 : index
    %c0_162 = arith.constant 0 : index
    %242 = vector.load %arg9[%c0_160, %c0_161, %c0_162] : memref<2x8x4xf32, #tpu.memory_space<vmem>>, vector<2x1x4xf32>
    %c0_163 = arith.constant 0 : index
    %c0_164 = arith.constant 0 : index
    %c0_165 = arith.constant 0 : index
    %243 = vector.load %arg5[%c0_163, %c0_164, %c0_165] : memref<2x1x16xf32, #tpu.memory_space<vmem>>, vector<2x1x4xf32>
    tpu.vector_store %arg5[%c0_163, %c0_164, %c0_165], %242 {strides = array<i32>} : memref<2x1x16xf32, #tpu.memory_space<vmem>>, vector<2x1x4xf32>,
    %c0_166 = arith.constant 0 : index
    %c2_167 = arith.constant 2 : index
    %c0_168 = arith.constant 0 : index
    %244 = vector.load %arg9[%c0_166, %c2_167, %c0_168] : memref<2x8x4xf32, #tpu.memory_space<vmem>>, vector<2x1x4xf32>
    %c0_169 = arith.constant 0 : index
    %c0_170 = arith.constant 0 : index
    %c4_171 = arith.constant 4 : index
    %245 = vector.load %arg5[%c0_169, %c0_170, %c4_171] : memref<2x1x16xf32, #tpu.memory_space<vmem>>, vector<2x1x4xf32>
    tpu.vector_store %arg5[%c0_169, %c0_170, %c4_171], %244 {strides = array<i32>} : memref<2x1x16xf32, #tpu.memory_space<vmem>>, vector<2x1x4xf32>,
    %c0_172 = arith.constant 0 : index
    %c4_173 = arith.constant 4 : index
    %c0_174 = arith.constant 0 : index
    %246 = vector.load %arg9[%c0_172, %c4_173, %c0_174] : memref<2x8x4xf32, #tpu.memory_space<vmem>>, vector<2x1x4xf32>
    %c0_175 = arith.constant 0 : index
    %c0_176 = arith.constant 0 : index
    %c8_177 = arith.constant 8 : index
    %247 = vector.load %arg5[%c0_175, %c0_176, %c8_177] : memref<2x1x16xf32, #tpu.memory_space<vmem>>, vector<2x1x4xf32>
    tpu.vector_store %arg5[%c0_175, %c0_176, %c8_177], %246 {strides = array<i32>} : memref<2x1x16xf32, #tpu.memory_space<vmem>>, vector<2x1x4xf32>,
    %c0_178 = arith.constant 0 : index
    %c6_179 = arith.constant 6 : index
    %c0_180 = arith.constant 0 : index
    %248 = vector.load %arg9[%c0_178, %c6_179, %c0_180] : memref<2x8x4xf32, #tpu.memory_space<vmem>>, vector<2x1x4xf32>
    %c0_181 = arith.constant 0 : index
    %c0_182 = arith.constant 0 : index
    %c12_183 = arith.constant 12 : index
    %249 = vector.load %arg5[%c0_181, %c0_182, %c12_183] : memref<2x1x16xf32, #tpu.memory_space<vmem>>, vector<2x1x4xf32>
    tpu.vector_store %arg5[%c0_181, %c0_182, %c12_183], %248 {strides = array<i32>} : memref<2x1x16xf32, #tpu.memory_space<vmem>>, vector<2x1x4xf32>,
    return
  }
}

</mosaic_0001>

<bundles_post_ra>
// kernel: tpu_custom_call.1
= control target key start
LH: loop header
LB: loop body
LE: loop exit
PB: predicated region body
PF: predicated region fallthrough
CT: control target
= control target key end

     0   :  { %12 = vsyncpa [#allocation9], 0  ;;  %s2967_s0 = inlined_call_operand.hbm [shape: f32[2,16,16], index: 0, kind: input, shape index: {}]   ;;  %s2968_s1 = inlined_call_operand.vmem [shape: f32[4,4], index: 1, kind: input, shape index: {}]   ;;  %s2969_s2 = inlined_call_operand.<no memory space> [shape: f32[1], index: 2, kind: input, shape index: {}]   ;;  %s2970_s3 = inlined_call_operand.hbm [shape: f32[4,4], index: 3, kind: input, shape index: {}]   ;;  %s2971_s4 = inlined_call_operand.<no memory space> [shape: f32[1], index: 4, kind: input, shape index: {}]   ;;  %s2972_s5 = inlined_call_operand.hbm [shape: f32[2,1,16], index: 5, kind: output, shape index: {}]  }
   0x1   :  { %13 = vsyncpa [#allocation12], 0 }
   0x2   :  { %14 = vsyncpa [#allocation11], 0 }
   0x3   :  { %15 = vsyncpa [#allocation10], 0  ;;  %s1753_s18 = smov [#allocation8]   ;;  %s34_s22 = sshll.u32 %s2968_s1, 4  ;;  %s35_s22 = int_to_ptr.vmem [resolvable:$true] %s34_s22 }
   0x4   :  { %s21_s19 = sshll.u32 %s1753_s18, 4  ;;  %s22_s19 = int_to_ptr.vmem [resolvable:$true] %s21_s19 }
   0x5   :  { %s1693_s23 = scalar_lea.vmem %s22_s19, 512  ;;  %p1698_p1 = scmp.lt.s32.totalorder %s22_s19, %s22_s19 }
   0x6   :  { %p1694_p0 = scmp.ne.s32.totalorder %s22_s19, %s1693_s23  ;;  %p1699_p2 = scmp.lt.s32.totalorder %s1693_s23, %s1693_s23 }
   0x8   :  { %p1700_p3 = por %p1699_p2, %p1698_p1 }
   0xa   :  { %p1701_p4 = pnand %p1700_p3, %p1694_p0 }
   0xc   :  { %1704 = shalt.err (!%p1701_p4)
}
   0xd   :  { %s1754_s24 = smov 128   ;;  %s1755_s25 = smov 8  }
   0xe   :  { %27 = dma.hbm_to_vmem [thread:$0]  %s2967_s0, 512, %s22_s19, [#allocation9], %s1754_s24, %s1754_s24, %s1755_s25  }
   0xf   :  { %s1705_s28 = scalar_lea.vmem %s35_s22, 64  ;;  %p1710_p6 = scmp.lt.s32.totalorder %s35_s22, %s35_s22 }
  0x10   :  { %p1706_p5 = scmp.ne.s32.totalorder %s35_s22, %s1705_s28  ;;  %p1711_p7 = scmp.lt.s32.totalorder %s1705_s28, %s1705_s28 }
  0x12   :  { %p1712_p8 = por %p1711_p7, %p1710_p6 }
  0x14   :  { %p1713_p9 = pnand %p1712_p8, %p1706_p5 }
  0x16   :  { %1716 = shalt.err (!%p1713_p9)
}
  0x17   :  { %s1756_s1 = smov [#allocation13]   ;;  %s1757_s29 = smov [#allocation14]  }
  0x18   :  { %37 = dma.vmem_to_smem %s35_s22, 64, %s1756_s1, [#allocation12]  }
  0x19   :  { %47 = dma.hbm_to_smem %s2970_s3, 64, %s1757_s29, [#allocation11]  }
  0x1a   :  { %1745 = dma.done.wait [#allocation9], 512  }
  0x1b   :  { %1746 = vsyncadd [#allocation9], 4294966784 }
  0x1c   :  { %1747 = dma.done.wait [#allocation12], 64  }
  0x1d   :  { %1748 = vsyncadd [#allocation12], 4294967232 }
  0x1e   :  { %1749 = dma.done.wait [#allocation11], 64  }
  0x1f   :  { %1750 = vsyncadd [#allocation11], 4294967232 }
  0x20   :  { %59 = sfence }
  0x21   :  { %v70_v0 = vld [vmem:[#allocation8 + $0x10] sm:$0xff]  ;;  %v68_v1 = vld [vmem:[#allocation8] sm:$0xff]  ;;  %vm60_vm0 = vcmask 162816   ;;  %s1758_s0 = smov 2   ;;  %vm63_vm1 = vcmask 158720   ;;  %v71_v2 = vld [vmem:[#allocation8 + $0x18] sm:$0xff] }
  0x22   :  { %80 = vrot.lane.b32.xlu1 %v70_v0, %s1758_s0  ;;  %76 = vrot.lane.b32.xlu0 %v68_v1, %s1758_s0  ;;  %v69_v3 = vld [vmem:[#allocation8 + $0x8] sm:$0xff]  ;;  %v2973_v4 = vmov 0.0   ;;  %s1639_s3 = sld [smem:[#allocation13 + $0x1]]  ;;  %vm88_vm2 = vcmask 146448   ;;  %s1760_s21 = smov 127   ;;  %vm164_vm3 = vcmask 1045504  }
  0x23   :  { %65 = vst.msk [vmem:[#allocation2 + $0x18] sm:$0xff] %vm60_vm0, %v2973_v4  ;;  %66 = vst.msk [vmem:[#allocation2 + $0x20] sm:$0xff] %vm60_vm0, %v2973_v4  ;;  %s1822_s7 = sld [smem:[#allocation13 + $0x2]]  ;;  %vm201_vm4 = vcmask 1044480   ;;  %vm127_vm5 = vcmask 1046528   ;;  %s1761_s23 = smov 126  }
  0x24   :  { %61 = vst.msk [vmem:[#allocation2] sm:$0xff] %vm60_vm0, %v2973_v4  ;;  %62 = vst.msk [vmem:[#allocation2 + $0x8] sm:$0xff] %vm60_vm0, %v2973_v4  ;;  %s1824_s8 = sld [smem:[#allocation13 + $0x3]]  ;;  %s1762_s24 = smov 125   ;;  %vm828_vm6 = vcmask 7168   ;;  %vm956_vm7 = vcmask 97280  }
  0x25   :  { %67 = vst.msk [vmem:[#allocation2 + $0x28] sm:$0xf] %vm63_vm1, %v2973_v4  ;;  %64 = vst.msk [vmem:[#allocation2 + $0x10] sm:$0xf] %vm63_vm1, %v2973_v4  ;;  %s1826_s9 = sld [smem:[#allocation13 + $0x81]]  ;;  %s1764_s28 = smov 123  }
  0x26   :  { %82 = vrot.lane.b32.xlu1 %v71_v2, %s1758_s0  ;;  %78 = vrot.lane.b32.xlu0 %v69_v3, %s1758_s0  ;;  %s1828_s10 = sld [smem:[#allocation13 + $0x101]]  ;;  %s1765_s1 = smov 122   ;;  %vm849_vm8 = vcmask 15368   ;;  %vm866_vm9 = vcmask 23568   ;;  %vm883_vm10 = vcmask 31768   ;;  %vm900_vm11 = vcmask 39968  }
  0x27   :  { %s1830_s11 = sld [smem:[#allocation13 + $0x181]]  ;;  %s1766_s29 = smov 121   ;;  %vm917_vm12 = vcmask 48168   ;;  %vm934_vm13 = vcmask 56368   ;;  %vm951_vm14 = vcmask 64568   ;;  %vm958_vm15 = vcmask 93184  }
  0x28   :  { %s1832_s12 = sld [smem:[#allocation13 + $0x82]]  ;;  %v225_v9 = vstv %s1639_s3  ;;  %vm972_vm0 = vcmask 73744   ;;  %vm1575_vm1 = vcmask 24576  }
  0x29   :  { %s1834_s13 = sld [smem:[#allocation13 + $0x102]]  ;;  %v407_v18 = vstv %s1822_s7 }
  0x2a   :  { %s1836_s14 = sld [smem:[#allocation13 + $0x182]]  ;;  %v589_v19 = vstv %s1824_s8 }
  0x2b   :  { %s1648_s15 = sld [smem:[#allocation13 + $0x83]]  ;;  %v1856_v20 = vstv %s1826_s9 }
  0x2c   :  { %s99_s16 = sld [smem:[#allocation13]]  ;;  %v311_v21 = vstv %s1828_s10 }
  0x2d   :  { %s1636_s17 = sld [smem:[#allocation13 + $0x80]]  ;;  %v1861_v22 = vstv %s1830_s11 }
  0x2e   :  { %s1637_s18 = sld [smem:[#allocation13 + $0x100]]  ;;  %v1864_v23 = vstv %s1832_s12 }
  0x2f   :  { %s1638_s19 = sld [smem:[#allocation13 + $0x180]]  ;;  %v1868_v25 = vstv %s1834_s13 }
  0x30   :  { %s1649_s20 = sld [smem:[#allocation13 + $0x103]]  ;;  %v1871_v26 = vstv %s1836_s14 }
  0x31   :  { %s1650_s22 = sld [smem:[#allocation13 + $0x183]]  ;;  %v1873_v27 = vstv %s1648_s15 }
  0x32   :  { %v1876_v29 = vstv %s99_s16  ;;  %s1654_s30 = sld [smem:[#allocation14 + $0x1]] }
  0x33   :  { %v1878_v30 = vstv %s1636_s17  ;;  %s1658_s6 = sld [smem:[#allocation14 + $0x2]] }
  0x34   :  { %v1880_v31 = vstv %s1637_s18  ;;  %s1655_s3 = sld [smem:[#allocation14 + $0x81]] }
  0x35   :  { %v1884_v33 = vstv %s1638_s19  ;;  %s1656_s7 = sld [smem:[#allocation14 + $0x101]] }
  0x36   :  { %v1886_v34 = vstv %s1649_s20  ;;  %s1657_s8 = sld [smem:[#allocation14 + $0x181]] }
  0x37   :  { %v1888_v35 = vstv %s1650_s22  ;;  %s1664_s9 = sld [smem:[#allocation14 + $0x103]]  ;;  %s1769_s22 = smov [#allocation15]  }
  0x38   :  { %s1665_s10 = sld [smem:[#allocation14 + $0x183]] }
  0x39   :  { %s1063_s11 = sld [smem:[#allocation14]] }
  0x3a   :  { %s1651_s12 = sld [smem:[#allocation14 + $0x80]] }
  0x3b   :  { %s1652_s13 = sld [smem:[#allocation14 + $0x100]] }
  0x3c   :  { %s2688_s14 = sld [smem:[#allocation14 + $0x180]] }
  0x3d   :  { %s1659_s15 = sld [smem:[#allocation14 + $0x82]] }
  0x3e   :  { %s1660_s16 = sld [smem:[#allocation14 + $0x102]] }
  0x3f   :  { %s1661_s17 = sld [smem:[#allocation14 + $0x182]] }
  0x40   :  { %s1663_s18 = sld [smem:[#allocation14 + $0x83]] }
  0x94   :  { %v81_v5 = vpop.permute.xlu1 %80  ;;  %v77_v6 = vpop.permute.xlu0 %76 }
  0x95   :  { %91 = vst.msk [vmem:[#allocation2 + $0x1a] sm:$0xff] %vm88_vm2, %v81_v5  ;;  %89 = vst.msk [vmem:[#allocation2 + $0x2] sm:$0xff] %vm88_vm2, %v77_v6 }
  0x98   :  { %v83_v7 = vpop.permute.xlu1 %82  ;;  %v79_v8 = vpop.permute.xlu0 %78 }
  0x99   :  { %92 = vst.msk [vmem:[#allocation2 + $0x22] sm:$0xff] %vm88_vm2, %v83_v7  ;;  %90 = vst.msk [vmem:[#allocation2 + $0xa] sm:$0xff] %vm88_vm2, %v79_v8  ;;  %vm1588_vm2 = vcmask 57376  }
  0x9c   :  { %v1838_v10 = vld [vmem:[#allocation2] sm:$0xff]  ;;  %v1847_v15 = vld [vmem:[#allocation2 + $0x18] sm:$0xff] }
  0x9d   :  { %v226_v11 = vmul.f32 %v225_v9, %v1838_v10  ;;  %v229_v24 = vmul.f32 %v225_v9, %v1847_v15  ;;  %v408_v32 = vmul.f32 %v407_v18, %v1838_v10  ;;  %v411_v37 = vmul.f32 %v407_v18, %v1847_v15 }
  0x9e   :  { %v1895_v38 = vmul.f32 %v589_v19, %v1838_v10  ;;  %v1898_v39 = vmul.f32 %v589_v19, %v1847_v15  ;;  %v315_v40 = vmul.f32 %v311_v21, %v1847_v15  ;;  %v312_v42 = vmul.f32 %v311_v21, %v1838_v10 }
  0x9f   :  { %238 = vrot.lane.b32.xlu0 %v226_v11, %s1760_s21  ;;  %v360_v43 = vmul.f32 %v1861_v22, %v1838_v10  ;;  %v363_v44 = vmul.f32 %v1861_v22, %v1847_v15  ;;  %v446_v47 = vmul.f32 %v1864_v23, %v1838_v10  ;;  %v449_v48 = vmul.f32 %v1864_v23, %v1847_v15 }
  0xa0   :  { %v1842_v12 = vld [vmem:[#allocation2 + $0x8] sm:$0xff]  ;;  %v1844_v13 = vld [vmem:[#allocation2 + $0x10] sm:$0xf]  ;;  %v1850_v17 = vld [vmem:[#allocation2 + $0x20] sm:$0xff]  ;;  %v329_v56 = vrot.slane %v315_v40, 2  ;;  %v324_v61 = vrot.slane %v312_v42, 2 }
  0xa1   :  { %v227_v14 = vmul.f32 %v225_v9, %v1842_v12  ;;  %v228_v16 = vmul.f32 %v225_v9, %v1844_v13  ;;  %v230_v28 = vmul.f32 %v225_v9, %v1850_v17  ;;  %v1890_v36 = vld [vmem:[#allocation2 + $0x28] sm:$0xf]  ;;  %v409_v45 = vmul.f32 %v407_v18, %v1842_v12 }
  0xa2   :  { %v231_v41 = vmul.f32 %v225_v9, %v1890_v36  ;;  %v410_v46 = vmul.f32 %v407_v18, %v1844_v13  ;;  %v412_v49 = vmul.f32 %v407_v18, %v1850_v17  ;;  %v413_v50 = vmul.f32 %v407_v18, %v1890_v36 }
  0xa3   :  { %240 = vrot.lane.b32.xlu1 %v227_v14, %s1760_s21  ;;  %242 = vrot.lane.b32.xlu0 %v228_v16, %s1760_s21  ;;  %v1917_v51 = vmul.f32 %v589_v19, %v1842_v12  ;;  %v1920_v52 = vmul.f32 %v589_v19, %v1844_v13  ;;  %v1924_v53 = vmul.f32 %v589_v19, %v1850_v17  ;;  %v377_v3 = vrot.slane %v363_v44, 3 }
  0xa4   :  { %v1927_v54 = vmul.f32 %v311_v21, %v1842_v12  ;;  %v1930_v55 = vmul.f32 %v311_v21, %v1850_v17  ;;  %v1933_v57 = vmul.f32 %v589_v19, %v1890_v36  ;;  %v1937_v58 = vmul.f32 %v1856_v20, %v1844_v13 }
  0xa5   :  { %v1941_v59 = vmul.f32 %v1856_v20, %v1890_v36  ;;  %v1944_v60 = vmul.f32 %v311_v21, %v1844_v13  ;;  %v1950_v0 = vmul.f32 %v1861_v22, %v1842_v12  ;;  %v1954_v1 = vmul.f32 %v311_v21, %v1890_v36 }
  0xa6   :  { %v2982_v62 = vrot.slane %v1927_v54, 2  ;;  %v2981_v63 = vrot.slane %v1930_v55, 2  ;;  %v1958_v2 = vmul.f32 %v1861_v22, %v1850_v17  ;;  %v1962_v5 = vmul.f32 %v1864_v23, %v1842_v12 }
  0xa7   :  { %244 = vrot.lane.b32.xlu1 %v229_v24, %s1760_s21  ;;  %246 = vrot.lane.b32.xlu0 %v230_v28, %s1760_s21  ;;  %v372_v8 = vrot.slane %v360_v43, 3  ;;  %v458_v9 = vrot.slane %v446_v47, 1  ;;  %v2980_v11 = vrot.slane %v1950_v0, 3  ;;  %v1980_v18 = vmul.f32 %v1864_v23, %v1850_v17 }
  0xa8   :  { %v1968_v6 = vsel %vm164_vm3, %v324_v61, %v2982_v62  ;;  %v1973_v7 = vsel %vm164_vm3, %v329_v56, %v2981_v63  ;;  %v2978_v14 = vrot.slane %v1958_v2, 3  ;;  %v2976_v16 = vrot.slane %v1962_v5, 1 }
  0xa9   :  { %v463_v19 = vrot.slane %v449_v48, 1  ;;  %v494_v21 = vmul.f32 %v1868_v25, %v1838_v10  ;;  %v1986_v24 = vmul.f32 %v1868_v25, %v1842_v12  ;;  %v1990_v28 = vmul.f32 %v1868_v25, %v1850_v17 }
  0xaa   :  { %v1999_v40 = vmul.f32 %v1861_v22, %v1890_v36  ;;  %v2009_v42 = vsel %vm201_vm4, %v377_v3, %v2978_v14  ;;  %v2975_v43 = vrot.slane %v1980_v18, 1  ;;  %v497_v47 = vmul.f32 %v1868_v25, %v1847_v15 }
  0xab   :  { %248 = vrot.lane.b32.xlu1 %v231_v41, %s1760_s21  ;;  %420 = vrot.lane.b32.xlu0 %v408_v32, %s1761_s23  ;;  %v1995_v32 = vmul.f32 %v1861_v22, %v1844_v13  ;;  %v2004_v41 = vsel %vm201_vm4, %v372_v8, %v2980_v11  ;;  %v2019_v22 = vsel %vm127_vm5, %v458_v9, %v2976_v16  ;;  %v506_v44 = vrot.slane %v494_v21, 2 }
  0xac   :  { %v542_v48 = vmul.f32 %v1871_v26, %v1838_v10  ;;  %v2035_v56 = vsel %vm127_vm5, %v463_v19, %v2975_v43  ;;  %v2039_v61 = vmul.f32 %v1871_v26, %v1842_v12  ;;  %v2043_v3 = vmul.f32 %v1871_v26, %v1850_v17 }
  0xad   :  { %v511_v19 = vrot.slane %v497_v47, 2  ;;  %v2068_v47 = vmul.f32 %v1873_v27, %v1842_v12  ;;  %v153_v62 = vmul.f32 %v1880_v31, %v1842_v12 }
  0xae   :  { %v554_v21 = vrot.slane %v542_v48, 3  ;;  %v2983_v4 = vrot.slane %v2039_v61, 3  ;;  %v2984_v43 = vrot.slane %v2043_v3, 3  ;;  %v2109_v48 = vmul.f32 %v1873_v27, %v1850_v17 }
  0xaf   :  { %422 = vrot.lane.b32.xlu1 %v409_v45, %s1761_s23  ;;  %424 = vrot.lane.b32.xlu0 %v410_v46, %s1761_s23  ;;  %v2977_v45 = vrot.slane %v1986_v24, 2  ;;  %v2979_v46 = vrot.slane %v1990_v28, 2  ;;  %3000 = vst [vmem:[#allocation20_spill] sm:$0xff] %v2068_v47  ;;  %v2985_v63 = vrot.slane %v2068_v47, 1 }
  0xb0   :  { %v2077_v14 = vsel %vm201_vm4, %v554_v21, %v2983_v4 }
  0xb1   :  { %v2051_v9 = vsel %vm164_vm3, %v506_v44, %v2977_v45  ;;  %v2062_v16 = vsel %vm164_vm3, %v511_v19, %v2979_v46  ;;  %v628_v44 = vmul.f32 %v1873_v27, %v1838_v10  ;;  %v166_v46 = vrot.slane %v153_v62, 2 }
  0xb3   :  { %426 = vrot.lane.b32.xlu1 %v411_v37, %s1761_s23  ;;  %428 = vrot.lane.b32.xlu0 %v412_v49, %s1761_s23  ;;  %v2014_v37 = vmul.f32 %v1864_v23, %v1844_v13  ;;  %v2030_v49 = vmul.f32 %v1864_v23, %v1890_v36  ;;  %v640_v11 = vrot.slane %v628_v44, 1  ;;  %v115_v44 = vmul.f32 %v1878_v30, %v1838_v10 }
  0xb5   :  { %v2099_v4 = vsel %vm127_vm5, %v640_v11, %v2985_v63  ;;  %v128_v45 = vrot.slane %v115_v44, 1  ;;  %v2115_v63 = vmul.f32 %v1878_v30, %v1844_v13 }
  0xb6   :  { %3002 = vst [vmem:[#allocation22_spill] sm:$0xff] %v2099_v4 }
  0xb7   :  { %430 = vrot.lane.b32.xlu1 %v413_v50, %s1761_s23  ;;  %602 = vrot.lane.b32.xlu0 %v1895_v38, %s1762_s24  ;;  %v545_v50 = vmul.f32 %v1871_v26, %v1847_v15  ;;  %v116_v38 = vmul.f32 %v1878_v30, %v1842_v12  ;;  %3003 = vst [vmem:[#allocation23_spill] sm:$0xff] %v2115_v63  ;;  %v2987_v4 = vrot.slane %v2115_v63, 1 }
  0xb9   :  { %v559_v19 = vrot.slane %v545_v50, 3  ;;  %v129_v50 = vrot.slane %v116_v38, 1  ;;  %v101_v38 = vmul.f32 %v1876_v29, %v1838_v10 }
  0xbb   :  { %604 = vrot.lane.b32.xlu1 %v1917_v51, %s1762_s24  ;;  %606 = vrot.lane.b32.xlu0 %v1920_v52, %s1762_s24  ;;  %v2090_v21 = vsel %vm201_vm4, %v559_v19, %v2984_v43  ;;  %v190_v51 = vmul.f32 %v1884_v33, %v1842_v12  ;;  %v152_v52 = vmul.f32 %v1880_v31, %v1838_v10 }
  0xbc   :  { %3001 = vst [vmem:[#allocation21_spill] sm:$0xff] %v2090_v21  ;;  %v189_v19 = vmul.f32 %v1884_v33, %v1838_v10  ;;  %v130_v8 = vsel %vm127_vm5, %v128_v45, %v129_v50  ;;  %v102_v45 = vmul.f32 %v1876_v29, %v1842_v12 }
  0xbd   :  { %v203_v43 = vrot.slane %v190_v51, 3  ;;  %v165_v11 = vrot.slane %v152_v52, 2  ;;  %v2119_v51 = vmul.f32 %v1880_v31, %v1844_v13  ;;  %v144_v52 = vadd.f32 %v130_v8, %v101_v38 }
  0xbe   :  { %v202_v62 = vrot.slane %v189_v19, 3  ;;  %v132_v8 = vsel %vm127_vm5, %v129_v50, %v2987_v4  ;;  %v631_v38 = vmul.f32 %v1873_v27, %v1847_v15 }
  0xbf   :  { %608 = vrot.lane.b32.xlu1 %v1898_v39, %s1762_s24  ;;  %3004 = vst [vmem:[#allocation24_spill] sm:$0xff] %v2119_v51  ;;  %610 = vrot.lane.b32.xlu0 %v1924_v53, %s1762_s24  ;;  %v2128_v39 = vmul.f32 %v1884_v33, %v1844_v13  ;;  %v167_v19 = vsel %vm164_vm3, %v165_v11, %v166_v46  ;;  %v2989_v53 = vrot.slane %v2119_v51, 2 }
  0xc0   :  { %v204_v47 = vsel %vm201_vm4, %v202_v62, %v203_v43  ;;  %v181_v23 = vadd.f32 %v167_v19, %v144_v52  ;;  %v676_v11 = vmul.f32 %v1886_v34, %v1838_v10  ;;  %v3006_v62 = vrot.slane %v1937_v58, 1 }
  0xc1   :  { %3005 = vst [vmem:[#allocation25_spill] sm:$0xff] %v2128_v39  ;;  %v145_v44 = vadd.f32 %v132_v8, %v102_v45  ;;  %v3007_v52 = vrot.slane %v2128_v39, 3  ;;  %v2159_v19 = vmul.f32 %v1868_v25, %v1844_v13  ;;  %v645_v63 = vrot.slane %v631_v38, 1 }
  0xc2   :  { %v2161_v4 = vadd.f32 %v204_v47, %v181_v23  ;;  %v2167_v45 = vmul.f32 %v1868_v25, %v1890_v36  ;;  %v3010_v23 = vrot.slane %v2109_v48, 1  ;;  %v155_v25 = vmul.f32 %v1880_v31, %v1847_v15 }
  0xc3   :  { %612 = vrot.lane.b32.xlu1 %v1933_v57, %s1762_s24  ;;  %290 = vrot.lane.b32.xlu0 %v3006_v62, %s1760_s21  ;;  %v169_v57 = vsel %vm164_vm3, %v166_v46, %v2989_v53  ;;  %v206_v50 = vsel %vm201_vm4, %v203_v43, %v3007_v52  ;;  %v677_v62 = vmul.f32 %v1886_v34, %v1842_v12  ;;  %v688_v46 = vrot.slane %v676_v11, 2 }
  0xc4   :  { %3008 = vst [vmem:[#allocation26_spill] sm:$0xff] %v2161_v4  ;;  %v182_v8 = vadd.f32 %v169_v57, %v145_v44  ;;  %v118_v53 = vmul.f32 %v1878_v30, %v1847_v15  ;;  %v3009_v43 = vrot.slane %v1941_v59, 1  ;;  %v2177_v47 = vsel %vm127_vm5, %v645_v63, %v3010_v23 }
  0xc5   :  { %3011 = vst [vmem:[#allocation27_spill] sm:$0xff] %v2177_v47  ;;  %v689_v38 = vrot.slane %v677_v62, 2  ;;  %v119_v52 = vmul.f32 %v1878_v30, %v1850_v17  ;;  %v3012_v44 = vrot.slane %v1944_v60, 2  ;;  %v2188_v11 = vmul.f32 %v1871_v26, %v1844_v13 }
  0xc6   :  { %v2190_v57 = vadd.f32 %v206_v50, %v182_v8  ;;  %v156_v63 = vmul.f32 %v1880_v31, %v1850_v17  ;;  %v170_v21 = vrot.slane %v155_v25, 2  ;;  %v192_v4 = vmul.f32 %v1884_v33, %v1847_v15 }
  0xc7   :  { %296 = vrot.lane.b32.xlu1 %v3009_v43, %s1760_s21  ;;  %338 = vrot.lane.b32.xlu0 %v3012_v44, %s1760_s21  ;;  %v133_v43 = vrot.slane %v118_v53, 1  ;;  %v2195_v62 = vsel %vm164_vm3, %v688_v46, %v689_v38  ;;  %v134_v23 = vrot.slane %v119_v52, 1  ;;  %v104_v44 = vmul.f32 %v1876_v29, %v1847_v15 }
  0xc8   :  { %3013 = vst [vmem:[#allocation28_spill] sm:$0xff] %v2190_v57  ;;  %3014 = vst [vmem:[#allocation29_spill] sm:$0xff] %v2195_v62  ;;  %v171_v39 = vrot.slane %v156_v63, 2  ;;  %v193_v50 = vmul.f32 %v1884_v33, %v1850_v17  ;;  %v2205_v53 = vmul.f32 %v1878_v30, %v1890_v36  ;;  %v3015_v8 = vrot.slane %v1954_v1, 2 }
  0xc9   :  { %v135_v46 = vsel %vm127_vm5, %v133_v43, %v134_v23  ;;  %v207_v52 = vrot.slane %v192_v4, 3  ;;  %v2213_v25 = vmul.f32 %v1880_v31, %v1890_v36  ;;  %v2217_v63 = vmul.f32 %v1884_v33, %v1890_v36 }
  0xca   :  { %v3017_v57 = vrot.slane %v1995_v32, 3  ;;  %v147_v30 = vadd.f32 %v135_v46, %v104_v44  ;;  %v172_v51 = vsel %vm164_vm3, %v170_v21, %v171_v39  ;;  %v208_v62 = vrot.slane %v193_v50, 3 }
  0xcb   :  { %344 = vrot.lane.b32.xlu1 %v3015_v8, %s1760_s21  ;;  %3016 = vst [vmem:[#allocation30_spill] sm:$0xff] %v2217_v63  ;;  %v2992_v8 = vrot.slane %v2205_v53, 1  ;;  %v105_v4 = vmul.f32 %v1876_v29, %v1850_v17  ;;  %v2993_v31 = vrot.slane %v2213_v25, 2  ;;  %v2230_v33 = vmul.f32 %v1886_v34, %v1844_v13 }
  0xcc   :  { %386 = vrot.lane.b32.xlu0 %v3017_v57, %s1760_s21  ;;  %v184_v47 = vadd.f32 %v172_v51, %v147_v30  ;;  %v209_v57 = vsel %vm201_vm4, %v207_v52, %v208_v62  ;;  %v679_v44 = vmul.f32 %v1886_v34, %v1847_v15  ;;  %v3018_v50 = vrot.slane %v1999_v40, 3 }
  0xcd   :  { %v137_v21 = vsel %vm127_vm5, %v134_v23, %v2992_v8  ;;  %v174_v43 = vsel %vm164_vm3, %v171_v39, %v2993_v31  ;;  %v3019_v51 = vrot.slane %v2217_v63, 3  ;;  %v2994_v30 = vrot.slane %v2230_v33, 2 }
  0xce   :  { %v148_v46 = vadd.f32 %v137_v21, %v105_v4  ;;  %v3020_v23 = vrot.slane %v2014_v37, 1  ;;  %v2253_v8 = vmul.f32 %v1871_v26, %v1890_v36  ;;  %v680_v4 = vmul.f32 %v1886_v34, %v1850_v17 }
  0xcf   :  { %392 = vrot.lane.b32.xlu1 %v3018_v50, %s1760_s21  ;;  %v211_v52 = vsel %vm201_vm4, %v208_v62, %v3019_v51  ;;  %v2255_v50 = vadd.f32 %v209_v57, %v184_v47  ;;  %v693_v39 = vrot.slane %v679_v44, 2  ;;  %v2262_v62 = vsel %vm164_vm3, %v689_v38, %v2994_v30 }
  0xd0   :  { %472 = vrot.lane.b32.xlu0 %v3020_v23, %s1761_s23  ;;  %v185_v21 = vadd.f32 %v174_v43, %v148_v46  ;;  %v2266_v51 = vmul.f32 %v1886_v34, %v1890_v36  ;;  %v724_v26 = vmul.f32 %v1888_v35, %v1838_v10  ;;  %v2996_v47 = vrot.slane %v2159_v19, 2 }
  0xd1   :  { %3021 = vst [vmem:[#allocation31_spill] sm:$0xff] %v2255_v50  ;;  %v694_v57 = vrot.slane %v680_v4, 2  ;;  %v725_v23 = vmul.f32 %v1888_v35, %v1842_v12  ;;  %v2275_v43 = vmul.f32 %v1888_v35, %v1844_v13  ;;  %v3022_v38 = vrot.slane %v2030_v49, 1 }
  0xd2   :  { %v2281_v44 = vadd.f32 %v211_v52, %v185_v21  ;;  %v2995_v46 = vrot.slane %v2266_v51, 2  ;;  %v727_v4 = vmul.f32 %v1888_v35, %v1847_v15  ;;  %v736_v30 = vrot.slane %v724_v26, 3 }
  0xd3   :  { %478 = vrot.lane.b32.xlu1 %v3022_v38, %s1761_s23  ;;  %v2290_v31 = vsel %vm164_vm3, %v693_v39, %v694_v57  ;;  %v737_v50 = vrot.slane %v725_v23, 3  ;;  %v2997_v38 = vrot.slane %v2275_v43, 3  ;;  %v728_v21 = vmul.f32 %v1888_v35, %v1850_v17 }
  0xd4   :  { %3023 = vst [vmem:[#allocation32_spill] sm:$0xff] %v2281_v44  ;;  %520 = vrot.lane.b32.xlu0 %v2996_v47, %s1761_s23  ;;  %v2296_v52 = vsel %vm164_vm3, %v694_v57, %v2995_v46  ;;  %v741_v34 = vrot.slane %v727_v4, 3  ;;  %v2302_v44 = vmul.f32 %v1888_v35, %v1890_v36  ;;  %v557_v39 = vrot.slane %v2188_v11, 3 }
  0xd5   :  { %v2307_v26 = vmul.f32 %v1873_v27, %v1844_v13  ;;  %v2310_v23 = vsel %vm201_vm4, %v736_v30, %v737_v50  ;;  %v2315_v57 = vsel %vm201_vm4, %v737_v50, %v2997_v38  ;;  %v3024_v4 = vrot.slane %v2167_v45, 2 }
  0xd6   :  { %v265_v35 = vmul.f32 %v1856_v20, %v1842_v12  ;;  %v742_v11 = vrot.slane %v728_v21, 3  ;;  %v2998_v46 = vrot.slane %v2302_v44, 3  ;;  %v264_v30 = vmul.f32 %v1856_v20, %v1838_v10 }
  0xd7   :  { %526 = vrot.lane.b32.xlu1 %v3024_v4, %s1761_s23  ;;  %v562_v47 = vrot.slane %v2253_v8, 3  ;;  %v633_v50 = vmul.f32 %v1873_v27, %v1890_v36  ;;  %v643_v21 = vrot.slane %v2307_v26, 1  ;;  %v268_v10 = vmul.f32 %v1856_v20, %v1850_v17 }
  0xd8   :  { %568 = vrot.lane.b32.xlu0 %v557_v39, %s1761_s23  ;;  %v2330_v38 = vsel %vm201_vm4, %v741_v34, %v742_v11  ;;  %v2335_v12 = vsel %vm201_vm4, %v742_v11, %v2998_v46  ;;  %v277_v4 = vrot.slane %v265_v35, 1  ;;  %v276_v27 = vrot.slane %v264_v30, 1 }
  0xd9   :  { %v648_v8 = vrot.slane %v633_v50, 1  ;;  %v267_v34 = vmul.f32 %v1856_v20, %v1847_v15  ;;  %v282_v46 = vrot.slane %v268_v10, 1  ;;  %v3025_v26 = vrot.slane %v1937_v58, 1 }
  0xda   :  { %v278_v11 = vsel %vm127_vm5, %v276_v27, %v277_v4  ;;  %v3026_v17 = vrot.slane %v1941_v59, 1  ;;  %v3027_v20 = vrot.slane %v1944_v60, 2  ;;  %v3028_v58 = vrot.slane %v1927_v54, 2 }
  0xdb   :  { %574 = vrot.lane.b32.xlu1 %v562_v47, %s1761_s23  ;;  %v280_v35 = vsel %vm127_vm5, %v277_v4, %v3025_v26  ;;  %v281_v63 = vrot.slane %v267_v34, 1  ;;  %v3029_v59 = vrot.slane %v1954_v1, 2  ;;  %v3030_v4 = vrot.slane %v1930_v55, 2  ;;  %v3050_v34 = vld [vmem:[#allocation27_spill] sm:$0xff] }
  0xdc   :  { %654 = vrot.lane.b32.xlu0 %v643_v21, %s1762_s24  ;;  %v285_v30 = vsel %vm127_vm5, %v282_v46, %v3026_v17  ;;  %v328_v50 = vsel %vm164_vm3, %v3028_v58, %v3027_v20  ;;  %v3031_v54 = vrot.slane %v1995_v32, 3  ;;  %v3032_v60 = vrot.slane %v1950_v0, 3 }
  0xdd   :  { %v283_v15 = vsel %vm127_vm5, %v281_v63, %v282_v46  ;;  %v333_v10 = vsel %vm164_vm3, %v3030_v4, %v3029_v59  ;;  %v3033_v55 = vrot.slane %v1999_v40, 3  ;;  %v3034_v1 = vrot.slane %v1958_v2, 3 }
  0xde   :  { %v3035_v0 = vrot.slane %v2014_v37, 1  ;;  %v3037_v2 = vrot.slane %v2030_v49, 1  ;;  %v3038_v40 = vrot.slane %v1980_v18, 1  ;;  %v3041_v18 = vrot.slane %v2167_v45, 2 }
  0xdf   :  { %660 = vrot.lane.b32.xlu1 %v648_v8, %s1762_s24  ;;  %v381_v63 = vsel %vm201_vm4, %v3034_v1, %v3033_v55 }
  0xe0   :  { %286 = vrot.lane.b32.xlu0 %v278_v11, %s1760_s21  ;;  %v3051_v11 = vld [vmem:[#allocation29_spill] sm:$0xff] }
  0xe3   :  { %288 = vrot.lane.b32.xlu1 %v280_v35, %s1760_s21 }
  0xe4   :  { %294 = vrot.lane.b32.xlu0 %v285_v30, %s1760_s21 }
  0xe7   :  { %292 = vrot.lane.b32.xlu1 %v283_v15, %s1760_s21 }
  0xe8   :  { %334 = vrot.lane.b32.xlu0 %v1968_v6, %s1760_s21  ;;  %v376_v6 = vsel %vm201_vm4, %v3032_v60, %v3031_v54 }
  0xeb   :  { %336 = vrot.lane.b32.xlu1 %v328_v50, %s1760_s21 }
  0xec   :  { %342 = vrot.lane.b32.xlu0 %v333_v10, %s1760_s21 }
  0xef   :  { %340 = vrot.lane.b32.xlu1 %v1973_v7, %s1760_s21  ;;  %v3036_v7 = vrot.slane %v1962_v5, 1  ;;  %v3039_v5 = vrot.slane %v2159_v19, 2  ;;  %v3045_v19 = vld [vmem:[#allocation21_spill] sm:$0xff] }
  0xf0   :  { %382 = vrot.lane.b32.xlu0 %v2004_v41, %s1760_s21  ;;  %v467_v41 = vsel %vm127_vm5, %v3038_v40, %v3037_v2 }
  0xf1   :  { %v462_v32 = vsel %vm127_vm5, %v3036_v7, %v3035_v0 }
  0xf3   :  { %384 = vrot.lane.b32.xlu1 %v376_v6, %s1760_s21 }
  0xf4   :  { %390 = vrot.lane.b32.xlu0 %v381_v63, %s1760_s21 }
  0xf7   :  { %388 = vrot.lane.b32.xlu1 %v2009_v42, %s1760_s21  ;;  %v3040_v42 = vrot.slane %v1986_v24, 2  ;;  %v3043_v24 = vrot.slane %v2039_v61, 3 }
  0xf8   :  { %468 = vrot.lane.b32.xlu0 %v2019_v22, %s1761_s23  ;;  %v3042_v22 = vrot.slane %v1990_v28, 2 }
  0xf9   :  { %v510_v37 = vsel %vm164_vm3, %v3040_v42, %v3039_v5 }
  0xfa   :  { %v515_v49 = vsel %vm164_vm3, %v3042_v22, %v3041_v18 }
  0xfb   :  { %470 = vrot.lane.b32.xlu1 %v462_v32, %s1761_s23 }
  0xfc   :  { %476 = vrot.lane.b32.xlu0 %v467_v41, %s1761_s23 }
  0xff   :  { %474 = vrot.lane.b32.xlu1 %v2035_v56, %s1761_s23  ;;  %v558_v56 = vsel %vm201_vm4, %v3043_v24, %v557_v39 }
 0x100   :  { %516 = vrot.lane.b32.xlu0 %v2051_v9, %s1761_s23  ;;  %v3044_v9 = vrot.slane %v2043_v3, 3  ;;  %v3049_v3 = vrot.slane %v2109_v48, 1  ;;  %v3052_v48 = vrot.slane %v2230_v33, 2 }
 0x102   :  { %v563_v28 = vsel %vm201_vm4, %v3044_v9, %v562_v47  ;;  %v649_v47 = vsel %vm127_vm5, %v3049_v3, %v648_v8 }
 0x103   :  { %518 = vrot.lane.b32.xlu1 %v510_v37, %s1761_s23 }
 0x104   :  { %524 = vrot.lane.b32.xlu0 %v515_v49, %s1761_s23 }
 0x107   :  { %522 = vrot.lane.b32.xlu1 %v2062_v16, %s1761_s23  ;;  %v3046_v16 = vld [vmem:[#allocation22_spill] sm:$0xff] }
 0x108   :  { %564 = vrot.lane.b32.xlu0 %v2077_v14, %s1761_s23  ;;  %v3047_v14 = vld [vmem:[#allocation20_spill] sm:$0xff] }
 0x109   :  { %v3048_v61 = vrot.slane %v3047_v14, 1 }
 0x10b   :  { %566 = vrot.lane.b32.xlu1 %v558_v56, %s1761_s23  ;;  %v644_v46 = vsel %vm127_vm5, %v3048_v61, %v643_v21 }
 0x10c   :  { %572 = vrot.lane.b32.xlu0 %v563_v28, %s1761_s23 }
 0x10f   :  { %570 = vrot.lane.b32.xlu1 %v3045_v19, %s1761_s23 }
 0x110   :  { %650 = vrot.lane.b32.xlu0 %v3046_v16, %s1762_s24  ;;  %v103_v16 = vmul.f32 %v1876_v29, %v1844_v13  ;;  %v3071_v13 = vld [vmem:[#allocation25_spill] sm:$0xff] }
 0x111   :  { %v2435_v45 = vpop.permute.xlu0 %238 }
 0x113   :  { %652 = vrot.lane.b32.xlu1 %v644_v46, %s1762_s24  ;;  %v3065_v46 = vld [vmem:[#allocation23_spill] sm:$0xff] }
 0x114   :  { %658 = vrot.lane.b32.xlu0 %v649_v47, %s1762_s24  ;;  %v3066_v3 = vrot.slane %v3065_v46, 1 }
 0x115   :  { %v2445_v39 = vpop.permute.xlu1 %240  ;;  %v2447_v27 = vpop.permute.xlu0 %242 }
 0x116   :  { %v146_v47 = vadd.f32 %v3066_v3, %v103_v16 }
 0x117   :  { %656 = vrot.lane.b32.xlu1 %v3050_v34, %s1762_s24 }
 0x118   :  { %698 = vrot.lane.b32.xlu0 %v3051_v11, %s1762_s24  ;;  %v106_v11 = vmul.f32 %v1876_v29, %v1890_v36  ;;  %v3074_v29 = vrot.slane %v2213_v25, 2 }
 0x119   :  { %v2453_v26 = vpop.permute.xlu1 %244  ;;  %v2455_v21 = vpop.permute.xlu0 %246 }
 0x11b   :  { %700 = vrot.lane.b32.xlu1 %v2262_v62, %s1762_s24  ;;  %v3053_v62 = vrot.slane %v2266_v51, 2 }
 0x11c   :  { %702 = vrot.lane.b32.xlu0 %v3052_v48, %s1762_s24 }
 0x11d   :  { %v2462_v8 = vpop.permute.xlu1 %248  ;;  %v2464_v35 = vpop.permute.xlu0 %420 }
 0x11f   :  { %704 = vrot.lane.b32.xlu1 %v2290_v31, %s1762_s24  ;;  %v3054_v31 = vrot.slane %v2275_v43, 3 }
 0x120   :  { %706 = vrot.lane.b32.xlu0 %v2296_v52, %s1762_s24 }
 0x121   :  { %v2470_v17 = vpop.permute.xlu1 %422  ;;  %v2472_v30 = vpop.permute.xlu0 %424 }
 0x123   :  { %708 = vrot.lane.b32.xlu1 %v3053_v62, %s1762_s24  ;;  %v3068_v62 = vld [vmem:[#allocation24_spill] sm:$0xff] }
 0x124   :  { %746 = vrot.lane.b32.xlu0 %v2310_v23, %s1762_s24 }
 0x125   :  { %v2479_v33 = vpop.permute.xlu1 %426  ;;  %v2481_v15 = vpop.permute.xlu0 %428 }
 0x127   :  { %748 = vrot.lane.b32.xlu1 %v2315_v57, %s1762_s24  ;;  %v3057_v57 = vrot.slane %v2302_v44, 3 }
 0x128   :  { %750 = vrot.lane.b32.xlu0 %v3054_v31, %s1762_s24  ;;  %v3069_v31 = vrot.slane %v3068_v62, 2 }
 0x129   :  { %v2488_v52 = vpop.permute.xlu1 %430  ;;  %v2490_v20 = vpop.permute.xlu0 %602 }
 0x12b   :  { %752 = vrot.lane.b32.xlu1 %v2330_v38, %s1762_s24 }
 0x12c   :  { %754 = vrot.lane.b32.xlu0 %v2335_v12, %s1762_s24 }
 0x12d   :  { %v2496_v51 = vpop.permute.xlu1 %604  ;;  %v2498_v23 = vpop.permute.xlu0 %606 }
 0x12e   :  { %3055 = vst [vmem:[#allocation21_spill] sm:$0xff] %v2496_v51  ;;  %3056 = vst [vmem:[#allocation22_spill] sm:$0xff] %v2498_v23  ;;  %v3073_v51 = vld [vmem:[#allocation26_spill] sm:$0xff] }
 0x12f   :  { %756 = vrot.lane.b32.xlu1 %v3057_v57, %s1762_s24  ;;  %v183_v57 = vadd.f32 %v3069_v31, %v146_v47  ;;  %v256_v16 = vadd.f32 %v2435_v45, %v3073_v51  ;;  %v3075_v31 = vld [vmem:[#allocation28_spill] sm:$0xff] }
 0x131   :  { %v2503_v43 = vpop.permute.xlu1 %608  ;;  %v2505_v58 = vpop.permute.xlu0 %610 }
 0x132   :  { %3058 = vst [vmem:[#allocation20_spill] sm:$0xff] %v2503_v43  ;;  %3059 = vst [vmem:[#allocation27_spill] sm:$0xff] %v2505_v58 }
 0x135   :  { %v2507_v50 = vpop.permute.xlu1 %612  ;;  %v291_v59 = vpop.permute.xlu0 %290 }
 0x136   :  { %3060 = vst [vmem:[#allocation29_spill] sm:$0xff] %v2507_v50  ;;  %v3070_v50 = vrot.slane %v2205_v53, 1  ;;  %v257_v53 = vadd.f32 %v2445_v39, %v3075_v31 }
 0x138   :  { %v149_v58 = vadd.f32 %v3070_v50, %v106_v11 }
 0x139   :  { %v297_v4 = vpop.permute.xlu1 %296  ;;  %v339_v38 = vpop.permute.xlu0 %338 }
 0x13a   :  { %v186_v36 = vadd.f32 %v3074_v29, %v149_v58 }
 0x13d   :  { %v2509_v10 = vpop.permute.xlu1 %344 }
 0x13e   :  { %v387_v12 = vpop.permute.xlu0 %386 }
 0x141   :  { %v2511_v54 = vpop.permute.xlu1 %392 }
 0x142   :  { %v2513_v60 = vpop.permute.xlu0 %472 }
 0x145   :  { %v2515_v6 = vpop.permute.xlu1 %478 }
 0x146   :  { %v2517_v44 = vpop.permute.xlu0 %520 }
 0x149   :  { %v2519_v55 = vpop.permute.xlu1 %526 }
 0x14a   :  { %3061 = vst [vmem:[#allocation33_spill] sm:$0xff] %v2519_v55  ;;  %v2521_v1 = vpop.permute.xlu0 %568 }
 0x14d   :  { %v2523_v63 = vpop.permute.xlu1 %574 }
 0x14e   :  { %3062 = vst [vmem:[#allocation34_spill] sm:$0xff] %v2523_v63  ;;  %v2525_v0 = vpop.permute.xlu0 %654 }
 0x14f   :  { %3063 = vst [vmem:[#allocation35_spill] sm:$0xff] %v2525_v0  ;;  %v3072_v0 = vrot.slane %v3071_v13, 3  ;;  %v3076_v13 = vld [vmem:[#allocation30_spill] sm:$0xff] }
 0x151   :  { %v2527_v7 = vpop.permute.xlu1 %660  ;;  %v220_v63 = vadd.f32 %v3072_v0, %v183_v57  ;;  %v3077_v0 = vrot.slane %v3076_v13, 3 }
 0x152   :  { %3064 = vst [vmem:[#allocation36_spill] sm:$0xff] %v2527_v7  ;;  %v287_v32 = vpop.permute.xlu0 %286 }
 0x153   :  { %v258_v46 = vadd.f32 %v2447_v27, %v220_v63  ;;  %v304_v47 = vadd.f32 %v287_v32, %v256_v16  ;;  %v223_v57 = vadd.f32 %v3077_v0, %v186_v36  ;;  %v3078_v63 = vld [vmem:[#allocation31_spill] sm:$0xff]  ;;  %v3079_v32 = vld [vmem:[#allocation32_spill] sm:$0xff]  ;;  %v3082_v0 = vld [vmem:[#allocation33_spill] sm:$0xff] }
 0x154   :  { %v259_v25 = vadd.f32 %v2453_v26, %v3078_v63  ;;  %v260_v16 = vadd.f32 %v2455_v21, %v3079_v32 }
 0x155   :  { %v289_v2 = vpop.permute.xlu1 %288  ;;  %v306_v62 = vadd.f32 %v291_v59, %v258_v46  ;;  %v261_v58 = vadd.f32 %v2462_v8, %v223_v57 }
 0x156   :  { %v295_v40 = vpop.permute.xlu0 %294  ;;  %v305_v23 = vadd.f32 %v289_v2, %v257_v53 }
 0x157   :  { %v354_v50 = vadd.f32 %v339_v38, %v306_v62  ;;  %v309_v38 = vadd.f32 %v297_v4, %v261_v58  ;;  %v308_v2 = vadd.f32 %v295_v40, %v260_v16 }
 0x159   :  { %v293_v41 = vpop.permute.xlu1 %292  ;;  %v402_v51 = vadd.f32 %v387_v12, %v354_v50 }
 0x15a   :  { %v335_v5 = vpop.permute.xlu0 %334 }
 0x15b   :  { %v352_v11 = vadd.f32 %v335_v5, %v304_v47  ;;  %v307_v5 = vadd.f32 %v293_v41, %v259_v25  ;;  %v440_v36 = vadd.f32 %v2472_v30, %v402_v51  ;;  %v3085_v25 = vld [vmem:[#allocation35_spill] sm:$0xff] }
 0x15d   :  { %v337_v42 = vpop.permute.xlu1 %336  ;;  %v488_v41 = vadd.f32 %v2513_v60, %v440_v36  ;;  %v3088_v36 = vld [vmem:[#allocation29_spill] sm:$0xff] }
 0x15e   :  { %v343_v37 = vpop.permute.xlu0 %342  ;;  %v353_v59 = vadd.f32 %v337_v42, %v305_v23 }
 0x15f   :  { %v356_v26 = vadd.f32 %v343_v37, %v308_v2  ;;  %v536_v40 = vadd.f32 %v2517_v44, %v488_v41 }
 0x161   :  { %v341_v18 = vpop.permute.xlu1 %340 }
 0x162   :  { %v383_v22 = vpop.permute.xlu0 %382  ;;  %v355_v62 = vadd.f32 %v341_v18, %v307_v5 }
 0x163   :  { %v400_v27 = vadd.f32 %v383_v22, %v352_v11  ;;  %v357_v22 = vadd.f32 %v2509_v10, %v309_v38 }
 0x165   :  { %v385_v49 = vpop.permute.xlu1 %384  ;;  %v438_v12 = vadd.f32 %v2464_v35, %v400_v27  ;;  %v405_v23 = vadd.f32 %v2511_v54, %v357_v22  ;;  %v584_v54 = vadd.f32 %v2521_v1, %v536_v40  ;;  %v3084_v27 = vld [vmem:[#allocation34_spill] sm:$0xff] }
 0x166   :  { %v391_v24 = vpop.permute.xlu0 %390  ;;  %v401_v46 = vadd.f32 %v385_v49, %v353_v59 }
 0x167   :  { %v404_v49 = vadd.f32 %v391_v24, %v356_v26  ;;  %v443_v10 = vadd.f32 %v2488_v52, %v405_v23  ;;  %v3080_v52 = vld [vmem:[#allocation22_spill] sm:$0xff] }
 0x168   :  { %v439_v21 = vadd.f32 %v2470_v17, %v401_v46  ;;  %v622_v11 = vadd.f32 %v3080_v52, %v584_v54 }
 0x169   :  { %v389_v56 = vpop.permute.xlu1 %388  ;;  %v442_v17 = vadd.f32 %v2481_v15, %v404_v49  ;;  %v3083_v15 = vld [vmem:[#allocation21_spill] sm:$0xff]  ;;  %v3089_v49 = vld [vmem:[#allocation36_spill] sm:$0xff] }
 0x16a   :  { %v469_v9 = vpop.permute.xlu0 %468  ;;  %v403_v42 = vadd.f32 %v389_v56, %v355_v62  ;;  %v670_v58 = vadd.f32 %v3085_v25, %v622_v11 }
 0x16b   :  { %v486_v47 = vadd.f32 %v469_v9, %v438_v12 }
 0x16c   :  { %v441_v37 = vadd.f32 %v2479_v33, %v403_v42 }
 0x16d   :  { %v471_v28 = vpop.permute.xlu1 %470 }
 0x16e   :  { %v2529_v19 = vpop.permute.xlu0 %476  ;;  %v487_v30 = vadd.f32 %v471_v28, %v439_v21 }
 0x16f   :  { %v490_v60 = vadd.f32 %v2529_v19, %v442_v17 }
 0x171   :  { %v475_v14 = vpop.permute.xlu1 %474 }
 0x172   :  { %v517_v61 = vpop.permute.xlu0 %516  ;;  %v489_v56 = vadd.f32 %v475_v14, %v441_v37 }
 0x173   :  { %v534_v31 = vadd.f32 %v517_v61, %v486_v47 }
 0x175   :  { %v519_v34 = vpop.permute.xlu1 %518 }
 0x176   :  { %v2537_v48 = vpop.permute.xlu0 %524  ;;  %v535_v18 = vadd.f32 %v519_v34, %v487_v30 }
 0x177   :  { %3067 = vst [vmem:[#allocation23_spill] sm:$0xff] %v2537_v48 }
 0x179   :  { %v523_v7 = vpop.permute.xlu1 %522 }
 0x17a   :  { %v565_v43 = vpop.permute.xlu0 %564  ;;  %v537_v44 = vadd.f32 %v523_v7, %v489_v56 }
 0x17b   :  { %v582_v35 = vadd.f32 %v565_v43, %v534_v31  ;;  %v491_v43 = vadd.f32 %v2515_v6, %v443_v10  ;;  %v771_v6 = vstv %s2969_s2  ;;  %s1763_s2 = smov 124  }
 0x17d   :  { %v567_v3 = vpop.permute.xlu1 %566  ;;  %v620_v24 = vadd.f32 %v2490_v20, %v582_v35  ;;  %v539_v1 = vadd.f32 %v3082_v0, %v491_v43 }
 0x17e   :  { %v573_v55 = vpop.permute.xlu0 %572  ;;  %v583_v50 = vadd.f32 %v567_v3, %v535_v18  ;;  %v3081_v33 = vld [vmem:[#allocation23_spill] sm:$0xff] }
 0x17f   :  { %v538_v34 = vadd.f32 %v3081_v33, %v490_v60  ;;  %v587_v20 = vadd.f32 %v3084_v27, %v539_v1 }
 0x180   :  { %v621_v14 = vadd.f32 %v3083_v15, %v583_v50 }
 0x181   :  { %v571_v48 = vpop.permute.xlu1 %570  ;;  %v586_v3 = vadd.f32 %v573_v55, %v538_v34  ;;  %v625_v2 = vadd.f32 %v3088_v36, %v587_v20 }
 0x182   :  { %v651_v45 = vpop.permute.xlu0 %650  ;;  %v585_v57 = vadd.f32 %v571_v48, %v537_v44  ;;  %v3087_v48 = vld [vmem:[#allocation27_spill] sm:$0xff] }
 0x183   :  { %v668_v13 = vadd.f32 %v651_v45, %v620_v24  ;;  %v3086_v45 = vld [vmem:[#allocation20_spill] sm:$0xff]  ;;  %v624_v38 = vadd.f32 %v3087_v48, %v586_v3  ;;  %v673_v31 = vadd.f32 %v3089_v49, %v625_v2 }
 0x184   :  { %v623_v32 = vadd.f32 %v3086_v45, %v585_v57 }
 0x185   :  { %v653_v39 = vpop.permute.xlu1 %652 }
 0x186   :  { %v659_v29 = vpop.permute.xlu0 %658  ;;  %v669_v63 = vadd.f32 %v653_v39, %v621_v14 }
 0x187   :  { %v672_v62 = vadd.f32 %v659_v29, %v624_v38 }
 0x189   :  { %v657_v8 = vpop.permute.xlu1 %656 }
 0x18a   :  { %v699_v4 = vpop.permute.xlu0 %698  ;;  %v671_v12 = vadd.f32 %v657_v8, %v623_v32 }
 0x18b   :  { %v716_v51 = vadd.f32 %v699_v4, %v668_v13 }
 0x18d   :  { %v701_v53 = vpop.permute.xlu1 %700 }
 0x18e   :  { %v703_v9 = vpop.permute.xlu0 %702  ;;  %v717_v16 = vadd.f32 %v701_v53, %v669_v63 }
 0x18f   :  { %v718_v5 = vadd.f32 %v703_v9, %v670_v58 }
 0x191   :  { %v705_v28 = vpop.permute.xlu1 %704 }
 0x192   :  { %v707_v61 = vpop.permute.xlu0 %706  ;;  %v719_v47 = vadd.f32 %v705_v28, %v671_v12 }
 0x193   :  { %v720_v21 = vadd.f32 %v707_v61, %v672_v62 }
 0x195   :  { %v709_v19 = vpop.permute.xlu1 %708 }
 0x196   :  { %v747_v7 = vpop.permute.xlu0 %746  ;;  %v721_v37 = vadd.f32 %v709_v19, %v673_v31 }
 0x197   :  { %v764_v59 = vadd.f32 %v747_v7, %v716_v51 }
 0x199   :  { %v772_v55 = vadd.f32 %v771_v6, %v764_v59  ;;  %v749_v46 = vpop.permute.xlu1 %748 }
 0x19a   :  { %v765_v39 = vadd.f32 %v749_v46, %v717_v16  ;;  %v751_v22 = vpop.permute.xlu0 %750 }
 0x19b   :  { %v766_v26 = vadd.f32 %v751_v22, %v718_v5  ;;  %v778_v23 = vmax.f32 %v772_v55, 0.0 }
 0x19c   :  { %v773_v42 = vadd.f32 %v771_v6, %v765_v39 }
 0x19d   :  { %v774_v4 = vadd.f32 %v771_v6, %v766_v26  ;;  %v753_v41 = vpop.permute.xlu1 %752  ;;  %v790_v18 = vrot.slane %v778_v23, 1 }
 0x19e   :  { %v779_v30 = vmax.f32 %v773_v42, 0.0  ;;  %v767_v40 = vadd.f32 %v753_v41, %v719_v47  ;;  %v755_v35 = vpop.permute.xlu0 %754 }
 0x19f   :  { %v780_v53 = vmax.f32 %v774_v4, 0.0  ;;  %v768_v10 = vadd.f32 %v755_v35, %v720_v21 }
 0x1a0   :  { %v791_v8 = vrot.slane %v779_v30, 1  ;;  %v775_v9 = vadd.f32 %v771_v6, %v767_v40 }
 0x1a1   :  { %v793_v54 = vrot.slane %v780_v53, 1  ;;  %v776_v29 = vadd.f32 %v771_v6, %v768_v10  ;;  %v757_v17 = vpop.permute.xlu1 %756 }
 0x1a2   :  { %v781_v56 = vmax.f32 %v775_v9, 0.0  ;;  %v769_v50 = vadd.f32 %v757_v17, %v721_v37  ;;  %v792_v60 = vsel %vm127_vm5, %v790_v18, %v791_v8 }
 0x1a3   :  { %v782_v24 = vmax.f32 %v776_v29, 0.0  ;;  %v794_v28 = vsel %vm127_vm5, %v791_v8, %v793_v54  ;;  %v804_v43 = vmax.f32 %v778_v23, %v792_v60 }
 0x1a4   :  { %v795_v44 = vrot.slane %v781_v56, 1  ;;  %v777_v61 = vadd.f32 %v771_v6, %v769_v50  ;;  %v805_v52 = vmax.f32 %v779_v30, %v794_v28  ;;  %v3090_v6 = vmov 0.0  }
 0x1a5   :  { %v796_v11 = vrot.slane %v782_v24, 1  ;;  %812 = vrot.lane.b32.xlu0 %v804_v43, %s1760_s21  ;;  %957 = vst.msk [vmem:[#allocation4] sm:$0xff] %vm956_vm7, %v3090_v6  ;;  %960 = vst.msk [vmem:[#allocation4 + $0x10] sm:$0xff] %vm956_vm7, %v3090_v6 }
 0x1a6   :  { %v783_v33 = vmax.f32 %v777_v61, 0.0  ;;  %814 = vrot.lane.b32.xlu1 %v805_v52, %s1760_s21  ;;  %959 = vst.msk [vmem:[#allocation4 + $0x8] sm:$0xf] %vm958_vm15, %v3090_v6  ;;  %961 = vst.msk [vmem:[#allocation4 + $0x18] sm:$0xf] %vm958_vm15, %v3090_v6 }
 0x1a7   :  { %v797_v34 = vsel %vm127_vm5, %v795_v44, %v796_v11 }
 0x1a8   :  { %v798_v13 = vrot.slane %v783_v33, 1  ;;  %v806_v0 = vmax.f32 %v781_v56, %v797_v34 }
 0x1aa   :  { %816 = vrot.lane.b32.xlu0 %v806_v0, %s1760_s21  ;;  %v799_v1 = vsel %vm127_vm5, %v796_v11, %v798_v13 }
 0x1ab   :  { %v807_v57 = vmax.f32 %v782_v24, %v799_v1 }
 0x1ad   :  { %818 = vrot.lane.b32.xlu1 %v807_v57, %s1760_s21 }
 0x217   :  { %v813_v15 = vpop.permute.xlu0 %812 }
 0x218   :  { %v815_v14 = vpop.permute.xlu1 %814  ;;  %v824_v3 = vmax.f32 %v804_v43, %v813_v15 }
 0x219   :  { %v825_v51 = vmax.f32 %v805_v52, %v815_v14 }
 0x21a   :  { %837 = vrot.lane.b32.xlu0 %v824_v3, %s1760_s21  ;;  %829 = vst.msk [vmem:[#allocation3] sm:$0xff] %vm828_vm6, %v824_v3 }
 0x21b   :  { %839 = vrot.lane.b32.xlu1 %v825_v51, %s1760_s21  ;;  %830 = vst.msk [vmem:[#allocation3 + $0x8] sm:$0xff] %vm828_vm6, %v825_v51 }
 0x21c   :  { %v817_v19 = vpop.permute.xlu0 %816 }
 0x21d   :  { %v826_v27 = vmax.f32 %v806_v0, %v817_v19 }
 0x21f   :  { %841 = vrot.lane.b32.xlu0 %v826_v27, %s1760_s21  ;;  %v819_v20 = vpop.permute.xlu1 %818  ;;  %831 = vst.msk [vmem:[#allocation3 + $0x10] sm:$0xff] %vm828_vm6, %v826_v27 }
 0x220   :  { %v827_v63 = vmax.f32 %v807_v57, %v819_v20 }
 0x222   :  { %843 = vrot.lane.b32.xlu1 %v827_v63, %s1760_s21  ;;  %832 = vst.msk [vmem:[#allocation3 + $0x18] sm:$0xff] %vm828_vm6, %v827_v63 }
 0x223   :  { %854 = vrot.lane.b32.xlu0 %v824_v3, %s1761_s23 }
 0x226   :  { %856 = vrot.lane.b32.xlu1 %v825_v51, %s1761_s23 }
 0x227   :  { %858 = vrot.lane.b32.xlu0 %v826_v27, %s1761_s23 }
 0x22a   :  { %860 = vrot.lane.b32.xlu1 %v827_v63, %s1761_s23 }
 0x22b   :  { %871 = vrot.lane.b32.xlu0 %v824_v3, %s1762_s24 }
 0x22e   :  { %873 = vrot.lane.b32.xlu1 %v825_v51, %s1762_s24 }
 0x22f   :  { %875 = vrot.lane.b32.xlu0 %v826_v27, %s1762_s24 }
 0x232   :  { %877 = vrot.lane.b32.xlu1 %v827_v63, %s1762_s24 }
 0x233   :  { %888 = vrot.lane.b32.xlu0 %v824_v3, %s1763_s2 }
 0x236   :  { %890 = vrot.lane.b32.xlu1 %v825_v51, %s1763_s2 }
 0x237   :  { %892 = vrot.lane.b32.xlu0 %v826_v27, %s1763_s2 }
 0x23a   :  { %894 = vrot.lane.b32.xlu1 %v827_v63, %s1763_s2 }
 0x23b   :  { %905 = vrot.lane.b32.xlu0 %v824_v3, %s1764_s28 }
 0x23e   :  { %907 = vrot.lane.b32.xlu1 %v825_v51, %s1764_s28 }
 0x23f   :  { %909 = vrot.lane.b32.xlu0 %v826_v27, %s1764_s28 }
 0x242   :  { %911 = vrot.lane.b32.xlu1 %v827_v63, %s1764_s28 }
 0x243   :  { %922 = vrot.lane.b32.xlu0 %v824_v3, %s1765_s1 }
 0x246   :  { %924 = vrot.lane.b32.xlu1 %v825_v51, %s1765_s1 }
 0x247   :  { %926 = vrot.lane.b32.xlu0 %v826_v27, %s1765_s1 }
 0x24a   :  { %928 = vrot.lane.b32.xlu1 %v827_v63, %s1765_s1 }
 0x24b   :  { %939 = vrot.lane.b32.xlu0 %v824_v3, %s1766_s29  ;;  %v1146_v3 = vstv %s1654_s30 }
 0x24e   :  { %941 = vrot.lane.b32.xlu1 %v825_v51, %s1766_s29 }
 0x24f   :  { %943 = vrot.lane.b32.xlu0 %v826_v27, %s1766_s29 }
 0x252   :  { %945 = vrot.lane.b32.xlu1 %v827_v63, %s1766_s29 }
 0x28c   :  { %v838_v7 = vpop.permute.xlu0 %837 }
 0x28d   :  { %v840_v25 = vpop.permute.xlu1 %839  ;;  %850 = vst.msk [vmem:[#allocation3] sm:$0xff] %vm849_vm8, %v838_v7 }
 0x28e   :  { %851 = vst.msk [vmem:[#allocation3 + $0x8] sm:$0xff] %vm849_vm8, %v840_v25  ;;  %v1268_v25 = vstv %s1658_s6 }
 0x291   :  { %v842_v58 = vpop.permute.xlu0 %841 }
 0x292   :  { %852 = vst.msk [vmem:[#allocation3 + $0x10] sm:$0xff] %vm849_vm8, %v842_v58 }
 0x294   :  { %v844_v59 = vpop.permute.xlu1 %843 }
 0x295   :  { %853 = vst.msk [vmem:[#allocation3 + $0x18] sm:$0xff] %vm849_vm8, %v844_v59  ;;  %v855_v45 = vpop.permute.xlu0 %854 }
 0x296   :  { %867 = vst.msk [vmem:[#allocation3] sm:$0xff] %vm866_vm9, %v855_v45 }
 0x298   :  { %v857_v32 = vpop.permute.xlu1 %856 }
 0x299   :  { %868 = vst.msk [vmem:[#allocation3 + $0x8] sm:$0xff] %vm866_vm9, %v857_v32  ;;  %v859_v16 = vpop.permute.xlu0 %858  ;;  %v1172_v32 = vstv %s1655_s3 }
 0x29a   :  { %869 = vst.msk [vmem:[#allocation3 + $0x10] sm:$0xff] %vm866_vm9, %v859_v16 }
 0x29c   :  { %v861_v48 = vpop.permute.xlu1 %860 }
 0x29d   :  { %870 = vst.msk [vmem:[#allocation3 + $0x18] sm:$0xff] %vm866_vm9, %v861_v48  ;;  %v872_v38 = vpop.permute.xlu0 %871 }
 0x29e   :  { %884 = vst.msk [vmem:[#allocation3] sm:$0xff] %vm883_vm10, %v872_v38  ;;  %v1204_v38 = vstv %s1656_s7 }
 0x2a0   :  { %v874_v5 = vpop.permute.xlu1 %873 }
 0x2a1   :  { %885 = vst.msk [vmem:[#allocation3 + $0x8] sm:$0xff] %vm883_vm10, %v874_v5  ;;  %v876_v55 = vpop.permute.xlu0 %875 }
 0x2a2   :  { %886 = vst.msk [vmem:[#allocation3 + $0x10] sm:$0xff] %vm883_vm10, %v876_v55 }
 0x2a4   :  { %v878_v46 = vpop.permute.xlu1 %877 }
 0x2a5   :  { %887 = vst.msk [vmem:[#allocation3 + $0x18] sm:$0xff] %vm883_vm10, %v878_v46  ;;  %v889_v36 = vpop.permute.xlu0 %888 }
 0x2a6   :  { %901 = vst.msk [vmem:[#allocation3] sm:$0xff] %vm900_vm11, %v889_v36 }
 0x2a8   :  { %v891_v2 = vpop.permute.xlu1 %890 }
 0x2a9   :  { %902 = vst.msk [vmem:[#allocation3 + $0x8] sm:$0xff] %vm900_vm11, %v891_v2  ;;  %v893_v12 = vpop.permute.xlu0 %892 }
 0x2aa   :  { %903 = vst.msk [vmem:[#allocation3 + $0x10] sm:$0xff] %vm900_vm11, %v893_v12 }
 0x2ac   :  { %v895_v39 = vpop.permute.xlu1 %894 }
 0x2ad   :  { %904 = vst.msk [vmem:[#allocation3 + $0x18] sm:$0xff] %vm900_vm11, %v895_v39  ;;  %v906_v22 = vpop.permute.xlu0 %905  ;;  %v2686_v39 = vstv %s1657_s8 }
 0x2ae   :  { %918 = vst.msk [vmem:[#allocation3] sm:$0xff] %vm917_vm12, %v906_v22  ;;  %v1448_v22 = vstv %s1664_s9 }
 0x2b0   :  { %v908_v62 = vpop.permute.xlu1 %907 }
 0x2b1   :  { %919 = vst.msk [vmem:[#allocation3 + $0x8] sm:$0xff] %vm917_vm12, %v908_v62  ;;  %v910_v26 = vpop.permute.xlu0 %909 }
 0x2b2   :  { %920 = vst.msk [vmem:[#allocation3 + $0x10] sm:$0xff] %vm917_vm12, %v910_v26  ;;  %v1480_v26 = vstv %s1665_s10 }
 0x2b4   :  { %v912_v47 = vpop.permute.xlu1 %911 }
 0x2b5   :  { %921 = vst.msk [vmem:[#allocation3 + $0x18] sm:$0xff] %vm917_vm12, %v912_v47  ;;  %v923_v23 = vpop.permute.xlu0 %922  ;;  %v2691_v47 = vstv %s1063_s11 }
 0x2b6   :  { %935 = vst.msk [vmem:[#allocation3] sm:$0xff] %vm934_vm13, %v923_v23  ;;  %v1074_v23 = vstv %s1651_s12 }
 0x2b8   :  { %v925_v42 = vpop.permute.xlu1 %924 }
 0x2b9   :  { %936 = vst.msk [vmem:[#allocation3 + $0x8] sm:$0xff] %vm934_vm13, %v925_v42  ;;  %v927_v21 = vpop.permute.xlu0 %926 }
 0x2ba   :  { %937 = vst.msk [vmem:[#allocation3 + $0x10] sm:$0xff] %vm934_vm13, %v927_v21 }
 0x2bc   :  { %v929_v4 = vpop.permute.xlu1 %928 }
 0x2bd   :  { %938 = vst.msk [vmem:[#allocation3 + $0x18] sm:$0xff] %vm934_vm13, %v929_v4  ;;  %v940_v41 = vpop.permute.xlu0 %939 }
 0x2be   :  { %952 = vst.msk [vmem:[#allocation3] sm:$0xff] %vm951_vm14, %v940_v41  ;;  %v2696_v41 = vstv %s1652_s13 }
 0x2c0   :  { %v942_v49 = vpop.permute.xlu1 %941 }
 0x2c1   :  { %953 = vst.msk [vmem:[#allocation3 + $0x8] sm:$0xff] %vm951_vm14, %v942_v49  ;;  %v944_v31 = vpop.permute.xlu0 %943 }
 0x2c2   :  { %954 = vst.msk [vmem:[#allocation3 + $0x10] sm:$0xff] %vm951_vm14, %v944_v31 }
 0x2c4   :  { %v946_v30 = vpop.permute.xlu1 %945 }
 0x2c5   :  { %955 = vst.msk [vmem:[#allocation3 + $0x18] sm:$0xff] %vm951_vm14, %v946_v30  ;;  %v962_v40 = vld [vmem:[#allocation3] sm:$0x1]  ;;  %v975_v35 = vld [vmem:[#allocation3 + $0x2] sm:$0x1] }
 0x2c6   :  { %966 = vrot.lane.b32.xlu0 %v962_v40, %s1758_s0  ;;  %v987_v10 = vld [vmem:[#allocation3 + $0x4] sm:$0x1]  ;;  %v999_v18 = vld [vmem:[#allocation3 + $0x6] sm:$0x1] }
 0x2c8   :  { %v1011_v9 = vld [vmem:[#allocation3 + $0x8] sm:$0x1]  ;;  %v1023_v29 = vld [vmem:[#allocation3 + $0xa] sm:$0x1]  ;;  %v1035_v56 = vld [vmem:[#allocation3 + $0xc] sm:$0x1] }
 0x2c9   :  { %v963_v53 = vld [vmem:[#allocation3 + $0x10] sm:$0x1]  ;;  %v976_v37 = vld [vmem:[#allocation3 + $0x12] sm:$0x1]  ;;  %v988_v8 = vld [vmem:[#allocation3 + $0x14] sm:$0x1] }
 0x2ca   :  { %979 = vrot.lane.b32.xlu0 %v975_v35, %s1758_s0  ;;  %968 = vrot.lane.b32.xlu1 %v963_v53, %s1758_s0  ;;  %v1000_v54 = vld [vmem:[#allocation3 + $0x16] sm:$0x1]  ;;  %v1047_v60 = vld [vmem:[#allocation3 + $0xe] sm:$0x1] }
 0x2cc   :  { %v1012_v17 = vld [vmem:[#allocation3 + $0x18] sm:$0x1]  ;;  %v1024_v50 = vld [vmem:[#allocation3 + $0x1a] sm:$0x1]  ;;  %v1036_v24 = vld [vmem:[#allocation3 + $0x1c] sm:$0x1] }
 0x2cd   :  { %v1048_v28 = vld [vmem:[#allocation3 + $0x1e] sm:$0x1] }
 0x2ce   :  { %991 = vrot.lane.b32.xlu0 %v987_v10, %s1758_s0  ;;  %981 = vrot.lane.b32.xlu1 %v976_v37, %s1758_s0 }
 0x2d2   :  { %1003 = vrot.lane.b32.xlu0 %v999_v18, %s1758_s0  ;;  %993 = vrot.lane.b32.xlu1 %v988_v8, %s1758_s0 }
 0x2d6   :  { %1015 = vrot.lane.b32.xlu0 %v1011_v9, %s1758_s0  ;;  %1005 = vrot.lane.b32.xlu1 %v1000_v54, %s1758_s0 }
 0x2da   :  { %1027 = vrot.lane.b32.xlu0 %v1023_v29, %s1758_s0  ;;  %1017 = vrot.lane.b32.xlu1 %v1012_v17, %s1758_s0 }
 0x2de   :  { %1039 = vrot.lane.b32.xlu0 %v1035_v56, %s1758_s0  ;;  %1029 = vrot.lane.b32.xlu1 %v1024_v50, %s1758_s0 }
 0x2e2   :  { %1051 = vrot.lane.b32.xlu0 %v1047_v60, %s1758_s0  ;;  %1041 = vrot.lane.b32.xlu1 %v1036_v24, %s1758_s0 }
 0x2e6   :  { %1053 = vrot.lane.b32.xlu1 %v1048_v28, %s1758_s0  ;;  %s1662_s0 = sld [smem:[#allocation14 + $0x3]] }
 0x2ec   :  { %v1390_v36 = vstv %s1662_s0 }
 0x338   :  { %v967_v43 = vpop.permute.xlu0 %966 }
 0x339   :  { %973 = vst.msk [vmem:[#allocation4 + $0x2] sm:$0x1] %vm972_vm0, %v967_v43 }
 0x33c   :  { %v969_v44 = vpop.permute.xlu1 %968  ;;  %v980_v61 = vpop.permute.xlu0 %979 }
 0x33d   :  { %974 = vst.msk [vmem:[#allocation4 + $0x12] sm:$0x1] %vm972_vm0, %v969_v44  ;;  %985 = vst.msk [vmem:[#allocation4 + $0x3] sm:$0x1] %vm972_vm0, %v980_v61 }
 0x340   :  { %v982_v52 = vpop.permute.xlu1 %981  ;;  %v992_v11 = vpop.permute.xlu0 %991 }
 0x341   :  { %986 = vst.msk [vmem:[#allocation4 + $0x13] sm:$0x1] %vm972_vm0, %v982_v52  ;;  %997 = vst.msk [vmem:[#allocation4 + $0x4] sm:$0x1] %vm972_vm0, %v992_v11  ;;  %v1122_v11 = vstv %s2688_s14 }
 0x344   :  { %v994_v33 = vpop.permute.xlu1 %993  ;;  %v1004_v34 = vpop.permute.xlu0 %1003 }
 0x345   :  { %998 = vst.msk [vmem:[#allocation4 + $0x14] sm:$0x1] %vm972_vm0, %v994_v33  ;;  %1009 = vst.msk [vmem:[#allocation4 + $0x5] sm:$0x1] %vm972_vm0, %v1004_v34 }
 0x348   :  { %v1006_v13 = vpop.permute.xlu1 %1005  ;;  %v1016_v0 = vpop.permute.xlu0 %1015 }
 0x349   :  { %1010 = vst.msk [vmem:[#allocation4 + $0x15] sm:$0x1] %vm972_vm0, %v1006_v13  ;;  %1021 = vst.msk [vmem:[#allocation4 + $0x6] sm:$0x1] %vm972_vm0, %v1016_v0 }
 0x34c   :  { %v1018_v1 = vpop.permute.xlu1 %1017  ;;  %v1028_v57 = vpop.permute.xlu0 %1027 }
 0x34d   :  { %1022 = vst.msk [vmem:[#allocation4 + $0x16] sm:$0x1] %vm972_vm0, %v1018_v1  ;;  %1033 = vst.msk [vmem:[#allocation4 + $0x7] sm:$0x1] %vm972_vm0, %v1028_v57 }
 0x350   :  { %v1030_v15 = vpop.permute.xlu1 %1029  ;;  %v1040_v14 = vpop.permute.xlu0 %1039 }
 0x351   :  { %1034 = vst.msk [vmem:[#allocation4 + $0x17] sm:$0x1] %vm972_vm0, %v1030_v15  ;;  %1045 = vst.msk [vmem:[#allocation4 + $0x8] sm:$0x1] %vm972_vm0, %v1040_v14 }
 0x354   :  { %v2655_v51 = vld [vmem:[#allocation4] sm:$0xff]  ;;  %v1042_v19 = vpop.permute.xlu1 %1041  ;;  %v1052_v27 = vpop.permute.xlu0 %1051 }
 0x355   :  { %1046 = vst.msk [vmem:[#allocation4 + $0x18] sm:$0x1] %vm972_vm0, %v1042_v19  ;;  %1057 = vst.msk [vmem:[#allocation4 + $0x9] sm:$0x1] %vm972_vm0, %v1052_v27  ;;  %v1147_v20 = vmul.f32 %v1146_v3, %v2655_v51  ;;  %v1269_v59 = vmul.f32 %v1268_v25, %v2655_v51  ;;  %v1173_v2 = vmul.f32 %v1172_v32, %v2655_v51 }
 0x356   :  { %v1205_v12 = vmul.f32 %v1204_v38, %v2655_v51  ;;  %v1391_v42 = vmul.f32 %v1390_v36, %v2655_v51  ;;  %v1449_v40 = vmul.f32 %v1448_v22, %v2655_v51  ;;  %v1481_v43 = vmul.f32 %v1480_v26, %v2655_v51 }
 0x357   :  { %1155 = vrot.lane.b32.xlu0 %v1147_v20, %s1760_s21  ;;  %v1181_v31 = vrot.slane %v1173_v2, 1  ;;  %v1075_v19 = vmul.f32 %v1074_v23, %v2655_v51  ;;  %v1099_v20 = vmul.f32 %v2696_v41, %v2655_v51 }
 0x358   :  { %v2661_v63 = vld [vmem:[#allocation4 + $0x10] sm:$0xff]  ;;  %v1054_v6 = vpop.permute.xlu1 %1053  ;;  %v1213_v53 = vrot.slane %v1205_v12, 2  ;;  %v1457_v60 = vrot.slane %v1449_v40, 2  ;;  %v1489_v1 = vrot.slane %v1481_v43, 3 }
 0x359   :  { %1058 = vst.msk [vmem:[#allocation4 + $0x19] sm:$0x1] %vm972_vm0, %v1054_v6  ;;  %v1149_v7 = vmul.f32 %v1146_v3, %v2661_v63  ;;  %v1271_v5 = vmul.f32 %v1268_v25, %v2661_v63  ;;  %v1393_v49 = vmul.f32 %v1390_v36, %v2661_v63  ;;  %v1175_v30 = vmul.f32 %v1172_v32, %v2661_v63 }
 0x35a   :  { %v2705_v10 = vmul.f32 %v1204_v38, %v2661_v63  ;;  %v1451_v50 = vmul.f32 %v1448_v22, %v2661_v63  ;;  %v1483_v61 = vmul.f32 %v1480_v26, %v2661_v63  ;;  %v1077_v12 = vmul.f32 %v1074_v23, %v2661_v63 }
 0x35b   :  { %1159 = vrot.lane.b32.xlu0 %v1149_v7, %s1760_s21  ;;  %v1184_v6 = vrot.slane %v1175_v30, 1 }
 0x35c   :  { %v2666_v58 = vld [vmem:[#allocation4 + $0x8] sm:$0xf]  ;;  %v1460_v13 = vrot.slane %v1451_v50, 2  ;;  %v1492_v15 = vrot.slane %v1483_v61, 3  ;;  %v1067_v50 = vmul.f32 %v2691_v47, %v2661_v63 }
 0x35d   :  { %v1148_v45 = vmul.f32 %v1146_v3, %v2666_v58  ;;  %v2675_v48 = vmul.f32 %v1172_v32, %v2666_v58  ;;  %v2680_v46 = vmul.f32 %v1204_v38, %v2666_v58  ;;  %v1270_v21 = vmul.f32 %v1268_v25, %v2666_v58 }
 0x35e   :  { %v1392_v35 = vmul.f32 %v1390_v36, %v2666_v58  ;;  %v2709_v37 = vmul.f32 %v2686_v39, %v2666_v58  ;;  %v2719_v54 = vmul.f32 %v1448_v22, %v2666_v58  ;;  %v2737_v44 = vmul.f32 %v1480_v26, %v2666_v58 }
 0x35f   :  { %1277 = vrot.lane.b32.xlu0 %v1269_v59, %s1761_s23  ;;  %1157 = vrot.lane.b32.xlu1 %v1148_v45, %s1760_s21  ;;  %v1182_v62 = vrot.slane %v2675_v48, 1  ;;  %v1214_v4 = vrot.slane %v2680_v46, 2  ;;  %v2760_v27 = vmul.f32 %v1074_v23, %v2666_v58  ;;  %v2778_v59 = vmul.f32 %v2696_v41, %v2666_v58 }
 0x360   :  { %v2672_v16 = vld [vmem:[#allocation4 + $0x18] sm:$0xf]  ;;  %v1458_v24 = vrot.slane %v2719_v54, 2  ;;  %v1490_v57 = vrot.slane %v2737_v44, 3  ;;  %v1065_v45 = vmul.f32 %v2691_v47, %v2655_v51  ;;  %v2786_v2 = vmul.f32 %v1122_v11, %v2666_v58 }
 0x361   :  { %v1150_v55 = vmul.f32 %v1146_v3, %v2672_v16  ;;  %v1272_v18 = vmul.f32 %v1268_v25, %v2672_v16  ;;  %v1183_v8 = vsel %vm127_vm5, %v1181_v31, %v1182_v62  ;;  %v2716_v9 = vmul.f32 %v1172_v32, %v2672_v16 }
 0x362   :  { %v1394_v29 = vmul.f32 %v1390_v36, %v2672_v16  ;;  %v1215_v17 = vsel %vm164_vm3, %v1213_v53, %v1214_v4  ;;  %v2726_v56 = vmul.f32 %v1204_v38, %v2672_v16  ;;  %v2731_v28 = vmul.f32 %v1448_v22, %v2672_v16 }
 0x363   :  { %1281 = vrot.lane.b32.xlu0 %v1271_v5, %s1761_s23  ;;  %1161 = vrot.lane.b32.xlu1 %v1150_v55, %s1760_s21  ;;  %v2741_v52 = vmul.f32 %v1480_v26, %v2672_v16  ;;  %v1185_v33 = vrot.slane %v2716_v9, 1  ;;  %v2748_v34 = vsel %vm164_vm3, %v1457_v60, %v1458_v24  ;;  %v2769_v7 = vsel %vm201_vm4, %v1489_v1, %v1490_v57 }
 0x364   :  { %v1461_v0 = vrot.slane %v2731_v28, 2  ;;  %v1083_v32 = vrot.slane %v1075_v19, 1  ;;  %v1084_v38 = vrot.slane %v2760_v27, 1  ;;  %v1123_v5 = vmul.f32 %v1122_v11, %v2655_v51 }
 0x365   :  { %v1493_v14 = vrot.slane %v2741_v52, 3  ;;  %v1107_v55 = vrot.slane %v1099_v20, 2  ;;  %v1108_v36 = vrot.slane %v2778_v59, 2  ;;  %v1186_v22 = vsel %vm127_vm5, %v1184_v6, %v1185_v33 }
 0x366   :  { %v2756_v3 = vsel %vm164_vm3, %v1460_v13, %v1461_v0  ;;  %v1085_v26 = vsel %vm127_vm5, %v1083_v32, %v1084_v38  ;;  %v1131_v30 = vrot.slane %v1123_v5, 3  ;;  %v1132_v40 = vrot.slane %v2786_v2, 3 }
 0x367   :  { %1399 = vrot.lane.b32.xlu0 %v1391_v42, %s1762_s24  ;;  %1279 = vrot.lane.b32.xlu1 %v1270_v21, %s1761_s23  ;;  %v2774_v25 = vsel %vm201_vm4, %v1492_v15, %v1493_v14  ;;  %v2796_v42 = vmul.f32 %v1074_v23, %v2672_v16  ;;  %v1101_v21 = vmul.f32 %v2696_v41, %v2661_v63  ;;  %v1217_v43 = vrot.slane %v2726_v56, 2 }
 0x368   :  { %v1109_v31 = vsel %vm164_vm3, %v1107_v55, %v1108_v36  ;;  %v2809_v23 = vmul.f32 %v2696_v41, %v2672_v16  ;;  %v2818_v60 = vmul.f32 %v1122_v11, %v2672_v16  ;;  %v1216_v56 = vrot.slane %v2705_v10, 2 }
 0x369   :  { %v1087_v53 = vrot.slane %v2796_v42, 1  ;;  %v1110_v61 = vrot.slane %v1101_v21, 2  ;;  %v1237_v20 = vmul.f32 %v2686_v39, %v2655_v51  ;;  %v1240_v32 = vmul.f32 %v2686_v39, %v2672_v16 }
 0x36a   :  { %v1111_v13 = vrot.slane %v2809_v23, 2  ;;  %v1135_v19 = vrot.slane %v2818_v60, 3  ;;  %v1239_v55 = vmul.f32 %v2686_v39, %v2661_v63  ;;  %v1068_v28 = vmul.f32 %v2691_v47, %v2672_v16 }
 0x36b   :  { %1403 = vrot.lane.b32.xlu0 %v1393_v49, %s1762_s24  ;;  %1283 = vrot.lane.b32.xlu1 %v1272_v18, %s1761_s23  ;;  %v1093_v49 = vadd.f32 %v1085_v26, %v1065_v45  ;;  %v1125_v18 = vmul.f32 %v1122_v11, %v2661_v63  ;;  %v1246_v45 = vrot.slane %v2709_v37, 3  ;;  %v1245_v5 = vrot.slane %v1237_v20, 3 }
 0x36c   :  { %v1112_v6 = vsel %vm164_vm3, %v1110_v61, %v1111_v13  ;;  %v1249_v37 = vrot.slane %v1240_v32, 3  ;;  %v1248_v9 = vrot.slane %v1239_v55, 3 }
 0x36d   :  { %v1134_v11 = vrot.slane %v1125_v18, 3 }
 0x36e   :  { %v1250_v21 = vsel %vm201_vm4, %v1248_v9, %v1249_v37 }
 0x36f   :  { %1187 = vrot.lane.b32.xlu0 %v1183_v8, %s1760_s21  ;;  %1401 = vrot.lane.b32.xlu1 %v1392_v35, %s1762_s24  ;;  %v1086_v35 = vrot.slane %v1077_v12, 1  ;;  %v1117_v8 = vadd.f32 %v1109_v31, %v1093_v49  ;;  %v1136_v48 = vsel %vm201_vm4, %v1134_v11, %v1135_v19  ;;  %v1294_v12 = vstv %s1659_s15 }
 0x370   :  { %v1296_v26 = vmul.f32 %v1294_v12, %v2666_v58  ;;  %v1298_v39 = vmul.f32 %v1294_v12, %v2672_v16  ;;  %v1358_v11 = vstv %s1661_s17 }
 0x371   :  { %v1088_v41 = vsel %vm127_vm5, %v1086_v35, %v1087_v53  ;;  %v1326_v35 = vstv %s1660_s16  ;;  %v1362_v32 = vmul.f32 %v1358_v11, %v2672_v16  ;;  %v1361_v55 = vmul.f32 %v1358_v11, %v2661_v63 }
 0x372   :  { %v1095_v15 = vadd.f32 %v1088_v41, %v1067_v50  ;;  %v1304_v49 = vrot.slane %v1296_v26, 1  ;;  %v1328_v18 = vmul.f32 %v1326_v35, %v2666_v58  ;;  %v1330_v41 = vmul.f32 %v1326_v35, %v2672_v16 }
 0x373   :  { %1191 = vrot.lane.b32.xlu0 %v1186_v22, %s1760_s21  ;;  %1405 = vrot.lane.b32.xlu1 %v1394_v29, %s1762_s24  ;;  %v1133_v29 = vsel %vm201_vm4, %v1131_v30, %v1132_v40  ;;  %v1247_v22 = vsel %vm201_vm4, %v1245_v5, %v1246_v45  ;;  %v1297_v30 = vmul.f32 %v1294_v12, %v2661_v63  ;;  %v1370_v9 = vrot.slane %v1361_v55, 3 }
 0x374   :  { %v2829_v1 = vadd.f32 %v1133_v29, %v1117_v8  ;;  %v1327_v29 = vmul.f32 %v1326_v35, %v2655_v51  ;;  %v1339_v20 = vrot.slane %v1330_v41, 2 }
 0x375   :  { %v1306_v8 = vrot.slane %v1297_v30, 1 }
 0x376   :  { %v1335_v61 = vrot.slane %v1327_v29, 2 }
 0x377   :  { %1219 = vrot.lane.b32.xlu0 %v1215_v17, %s1760_s21  ;;  %1189 = vrot.lane.b32.xlu1 %v1182_v62, %s1760_s21  ;;  %v1119_v17 = vadd.f32 %v1112_v6, %v1095_v15  ;;  %v1218_v62 = vsel %vm164_vm3, %v1216_v56, %v1217_v43  ;;  %v1329_v15 = vmul.f32 %v1326_v35, %v2661_v63 }
 0x378   :  { %v1360_v6 = vmul.f32 %v1358_v11, %v2666_v58 }
 0x379   :  { %v2849_v10 = vadd.f32 %v1136_v48, %v1119_v17  ;;  %v1338_v17 = vrot.slane %v1329_v15, 2  ;;  %v1359_v48 = vmul.f32 %v1358_v11, %v2655_v51 }
 0x37b   :  { %1223 = vrot.lane.b32.xlu0 %v1218_v62, %s1760_s21  ;;  %1193 = vrot.lane.b32.xlu1 %v1185_v33, %s1760_s21  ;;  %v1295_v33 = vmul.f32 %v1294_v12, %v2655_v51  ;;  %v1340_v62 = vsel %vm164_vm3, %v1338_v17, %v1339_v20  ;;  %v1367_v5 = vrot.slane %v1359_v48, 3  ;;  %v1416_v12 = vstv %s1663_s18 }
 0x37c   :  { %v1418_v26 = vmul.f32 %v1416_v12, %v2666_v58  ;;  %v1419_v30 = vmul.f32 %v1416_v12, %v2661_v63  ;;  %v1066_v63 = vmul.f32 %v2691_v47, %v2666_v58 }
 0x37d   :  { %v1303_v31 = vrot.slane %v1295_v33, 1  ;;  %v1417_v33 = vmul.f32 %v1416_v12, %v2655_v51 }
 0x37e   :  { %v1428_v51 = vrot.slane %v1419_v30, 1  ;;  %v1094_v54 = vadd.f32 %v1084_v38, %v1066_v63 }
 0x37f   :  { %1251 = vrot.lane.b32.xlu0 %v1247_v22, %s1760_s21  ;;  %1221 = vrot.lane.b32.xlu1 %v1214_v4, %s1760_s21  ;;  %v1305_v46 = vsel %vm127_vm5, %v1303_v31, %v1304_v49  ;;  %v1307_v4 = vrot.slane %v1298_v39, 1  ;;  %v1420_v39 = vmul.f32 %v1416_v12, %v2672_v16  ;;  %v1425_v31 = vrot.slane %v1417_v33, 1 }
 0x380   :  { %v1118_v44 = vadd.f32 %v1108_v36, %v1094_v54 }
 0x381   :  { %v1308_v50 = vsel %vm127_vm5, %v1306_v8, %v1307_v4 }
 0x382   :  { %v1142_v58 = vadd.f32 %v1132_v40, %v1118_v44 }
 0x383   :  { %1255 = vrot.lane.b32.xlu0 %v1250_v21, %s1760_s21  ;;  %1225 = vrot.lane.b32.xlu1 %v1217_v43, %s1760_s21  ;;  %v1336_v43 = vrot.slane %v1328_v18, 2 }
 0x385   :  { %v1337_v56 = vsel %vm164_vm3, %v1335_v61, %v1336_v43  ;;  %vm1601_vm3 = vcmask 90176  }
 0x387   :  { %1309 = vrot.lane.b32.xlu0 %v1305_v46, %s1761_s23  ;;  %1253 = vrot.lane.b32.xlu1 %v1246_v45, %s1760_s21  ;;  %v1368_v45 = vrot.slane %v1360_v6, 3  ;;  %v1429_v46 = vrot.slane %v1420_v39, 1 }
 0x389   :  { %v1369_v22 = vsel %vm201_vm4, %v1367_v5, %v1368_v45 }
 0x38b   :  { %1313 = vrot.lane.b32.xlu0 %v1308_v50, %s1761_s23  ;;  %1257 = vrot.lane.b32.xlu1 %v1249_v37, %s1760_s21  ;;  %v1371_v37 = vrot.slane %v1362_v32, 3 }
 0x38d   :  { %v1372_v21 = vsel %vm201_vm4, %v1370_v9, %v1371_v37  ;;  %vm1614_vm4 = vcmask 122976  }
 0x38f   :  { %1341 = vrot.lane.b32.xlu0 %v1337_v56, %s1761_s23  ;;  %1311 = vrot.lane.b32.xlu1 %v1304_v49, %s1761_s23  ;;  %v1426_v49 = vrot.slane %v1418_v26, 1 }
 0x391   :  { %v1427_v35 = vsel %vm127_vm5, %v1425_v31, %v1426_v49 }
 0x393   :  { %1345 = vrot.lane.b32.xlu0 %v1340_v62, %s1761_s23  ;;  %1315 = vrot.lane.b32.xlu1 %v1307_v4, %s1761_s23  ;;  %v1430_v4 = vsel %vm127_vm5, %v1428_v51, %v1429_v46 }
 0x397   :  { %1373 = vrot.lane.b32.xlu0 %v1369_v22, %s1761_s23  ;;  %1343 = vrot.lane.b32.xlu1 %v1336_v43, %s1761_s23 }
 0x39b   :  { %1377 = vrot.lane.b32.xlu0 %v1372_v21, %s1761_s23  ;;  %1347 = vrot.lane.b32.xlu1 %v1339_v20, %s1761_s23 }
 0x39f   :  { %1431 = vrot.lane.b32.xlu0 %v1427_v35, %s1762_s24  ;;  %1375 = vrot.lane.b32.xlu1 %v1368_v45, %s1761_s23 }
 0x3a3   :  { %1435 = vrot.lane.b32.xlu0 %v1430_v4, %s1762_s24  ;;  %1379 = vrot.lane.b32.xlu1 %v1371_v37, %s1761_s23 }
 0x3a7   :  { %1463 = vrot.lane.b32.xlu0 %v2748_v34, %s1762_s24  ;;  %1433 = vrot.lane.b32.xlu1 %v1426_v49, %s1762_s24 }
 0x3ab   :  { %1467 = vrot.lane.b32.xlu0 %v2756_v3, %s1762_s24  ;;  %1437 = vrot.lane.b32.xlu1 %v1429_v46, %s1762_s24 }
 0x3af   :  { %1495 = vrot.lane.b32.xlu0 %v2769_v7, %s1762_s24  ;;  %1465 = vrot.lane.b32.xlu1 %v1458_v24, %s1762_s24 }
 0x3b3   :  { %1499 = vrot.lane.b32.xlu0 %v2774_v25, %s1762_s24  ;;  %1469 = vrot.lane.b32.xlu1 %v1461_v0, %s1762_s24  ;;  %v1096_v0 = vadd.f32 %v1087_v53, %v1068_v28 }
 0x3b7   :  { %1497 = vrot.lane.b32.xlu1 %v1490_v57, %s1762_s24 }
 0x3bb   :  { %1501 = vrot.lane.b32.xlu1 %v1493_v14, %s1762_s24  ;;  %v1120_v14 = vadd.f32 %v1111_v13, %v1096_v0 }
 0x3bd   :  { %v1144_v16 = vadd.f32 %v1135_v19, %v1120_v14 }
 0x3c9   :  { %v1156_v24 = vpop.permute.xlu0 %1155 }
 0x3ca   :  { %v1167_v34 = vadd.f32 %v1156_v24, %v2829_v1 }
 0x3cd   :  { %v1160_v52 = vpop.permute.xlu0 %1159 }
 0x3ce   :  { %v1169_v57 = vadd.f32 %v1160_v52, %v2849_v10 }
 0x3d1   :  { %v1158_v3 = vpop.permute.xlu1 %1157  ;;  %v1278_v27 = vpop.permute.xlu0 %1277 }
 0x3d2   :  { %v1168_v7 = vadd.f32 %v1158_v3, %v1142_v58 }
 0x3d5   :  { %v1162_v47 = vpop.permute.xlu1 %1161  ;;  %v1282_v25 = vpop.permute.xlu0 %1281 }
 0x3d6   :  { %v1170_v59 = vadd.f32 %v1162_v47, %v1144_v16 }
 0x3d9   :  { %v1280_v38 = vpop.permute.xlu1 %1279  ;;  %v1400_v36 = vpop.permute.xlu0 %1399 }
 0x3dd   :  { %v1284_v42 = vpop.permute.xlu1 %1283  ;;  %v1404_v53 = vpop.permute.xlu0 %1403 }
 0x3e1   :  { %v1402_v1 = vpop.permute.xlu1 %1401  ;;  %v1188_v10 = vpop.permute.xlu0 %1187 }
 0x3e2   :  { %v1199_v29 = vadd.f32 %v1188_v10, %v1167_v34 }
 0x3e5   :  { %v1406_v2 = vpop.permute.xlu1 %1405  ;;  %v1192_v40 = vpop.permute.xlu0 %1191 }
 0x3e6   :  { %v1201_v19 = vadd.f32 %v1192_v40, %v1169_v57 }
 0x3e9   :  { %v1190_v18 = vpop.permute.xlu1 %1189  ;;  %v1220_v23 = vpop.permute.xlu0 %1219 }
 0x3ea   :  { %v1231_v50 = vadd.f32 %v1220_v23, %v1199_v29  ;;  %v1200_v20 = vadd.f32 %v1190_v18, %v1168_v7  ;;  %v1512_v29 = vstv %s2971_s4  ;;  %s1767_s4 = smov 4  }
 0x3ed   :  { %v1194_v13 = vpop.permute.xlu1 %1193  ;;  %v1224_v8 = vpop.permute.xlu0 %1223 }
 0x3ee   :  { %v1233_v61 = vadd.f32 %v1224_v8, %v1201_v19  ;;  %v1202_v32 = vadd.f32 %v1194_v13, %v1170_v59 }
 0x3f1   :  { %v1222_v43 = vpop.permute.xlu1 %1221  ;;  %v1252_v60 = vpop.permute.xlu0 %1251 }
 0x3f2   :  { %v1263_v41 = vadd.f32 %v1252_v60, %v1231_v50  ;;  %v1232_v17 = vadd.f32 %v1222_v43, %v1200_v20 }
 0x3f4   :  { %v1289_v15 = vadd.f32 %v1278_v27, %v1263_v41 }
 0x3f5   :  { %v1226_v11 = vpop.permute.xlu1 %1225  ;;  %v1256_v56 = vpop.permute.xlu0 %1255 }
 0x3f6   :  { %v1265_v6 = vadd.f32 %v1256_v56, %v1233_v61  ;;  %v1234_v55 = vadd.f32 %v1226_v11, %v1202_v32 }
 0x3f8   :  { %v1291_v48 = vadd.f32 %v1282_v25, %v1265_v6 }
 0x3f9   :  { %v1254_v62 = vpop.permute.xlu1 %1253  ;;  %v1310_v45 = vpop.permute.xlu0 %1309 }
 0x3fa   :  { %v1264_v5 = vadd.f32 %v1254_v62, %v1232_v17  ;;  %v1321_v31 = vadd.f32 %v1310_v45, %v1289_v15 }
 0x3fc   :  { %v1290_v12 = vadd.f32 %v1280_v38, %v1264_v5 }
 0x3fd   :  { %v1258_v22 = vpop.permute.xlu1 %1257  ;;  %v1314_v37 = vpop.permute.xlu0 %1313 }
 0x3fe   :  { %v1266_v26 = vadd.f32 %v1258_v22, %v1234_v55  ;;  %v1323_v51 = vadd.f32 %v1314_v37, %v1291_v48 }
 0x400   :  { %v1292_v9 = vadd.f32 %v1284_v42, %v1266_v26 }
 0x401   :  { %v1312_v33 = vpop.permute.xlu1 %1311  ;;  %v1342_v21 = vpop.permute.xlu0 %1341 }
 0x402   :  { %v1353_v30 = vadd.f32 %v1342_v21, %v1321_v31  ;;  %v1322_v28 = vadd.f32 %v1312_v33, %v1290_v12 }
 0x405   :  { %v1316_v49 = vpop.permute.xlu1 %1315  ;;  %v1346_v39 = vpop.permute.xlu0 %1345 }
 0x406   :  { %v1355_v63 = vadd.f32 %v1346_v39, %v1323_v51  ;;  %v1324_v14 = vadd.f32 %v1316_v49, %v1292_v9 }
 0x409   :  { %v1344_v35 = vpop.permute.xlu1 %1343  ;;  %v1374_v46 = vpop.permute.xlu0 %1373 }
 0x40a   :  { %v1385_v4 = vadd.f32 %v1374_v46, %v1353_v30  ;;  %v1354_v0 = vadd.f32 %v1344_v35, %v1322_v28 }
 0x40c   :  { %v1411_v54 = vadd.f32 %v1400_v36, %v1385_v4 }
 0x40d   :  { %v1348_v24 = vpop.permute.xlu1 %1347  ;;  %v1378_v34 = vpop.permute.xlu0 %1377 }
 0x40e   :  { %v1387_v44 = vadd.f32 %v1378_v34, %v1355_v63  ;;  %v1356_v27 = vadd.f32 %v1348_v24, %v1324_v14 }
 0x410   :  { %v1413_v52 = vadd.f32 %v1404_v53, %v1387_v44 }
 0x411   :  { %v1376_v57 = vpop.permute.xlu1 %1375  ;;  %v1432_v58 = vpop.permute.xlu0 %1431 }
 0x412   :  { %v1386_v3 = vadd.f32 %v1376_v57, %v1354_v0  ;;  %v1443_v40 = vadd.f32 %v1432_v58, %v1411_v54 }
 0x414   :  { %v1412_v7 = vadd.f32 %v1402_v1, %v1386_v3 }
 0x415   :  { %v1380_v16 = vpop.permute.xlu1 %1379  ;;  %v1436_v47 = vpop.permute.xlu0 %1435 }
 0x416   :  { %v1388_v25 = vadd.f32 %v1380_v16, %v1356_v27  ;;  %v1445_v8 = vadd.f32 %v1436_v47, %v1413_v52 }
 0x418   :  { %v1414_v59 = vadd.f32 %v1406_v2, %v1388_v25 }
 0x419   :  { %v1434_v38 = vpop.permute.xlu1 %1433  ;;  %v1464_v42 = vpop.permute.xlu0 %1463 }
 0x41a   :  { %v1475_v13 = vadd.f32 %v1464_v42, %v1443_v40  ;;  %v1444_v43 = vadd.f32 %v1434_v38, %v1412_v7 }
 0x41d   :  { %v1438_v10 = vpop.permute.xlu1 %1437  ;;  %v1468_v36 = vpop.permute.xlu0 %1467 }
 0x41e   :  { %v1477_v60 = vadd.f32 %v1468_v36, %v1445_v8  ;;  %v1446_v15 = vadd.f32 %v1438_v10, %v1414_v59 }
 0x421   :  { %v1466_v18 = vpop.permute.xlu1 %1465  ;;  %v1496_v23 = vpop.permute.xlu0 %1495 }
 0x422   :  { %v1507_v53 = vadd.f32 %v1496_v23, %v1475_v13  ;;  %v1476_v19 = vadd.f32 %v1466_v18, %v1444_v43 }
 0x424   :  { %v1513_v2 = vadd.f32 %v1512_v29, %v1507_v53 }
 0x425   :  { %v1470_v50 = vpop.permute.xlu1 %1469  ;;  %v1500_v1 = vpop.permute.xlu0 %1499 }
 0x426   :  { %v1509_v41 = vadd.f32 %v1500_v1, %v1477_v60  ;;  %v1517_v56 = vmax.f32 %v1513_v2, 0.0  ;;  %v1478_v20 = vadd.f32 %v1470_v50, %v1446_v15 }
 0x428   :  { %v1515_v6 = vadd.f32 %v1512_v29, %v1509_v41  ;;  %v1525_v32 = vrot.slane %v1517_v56, 1 }
 0x429   :  { %v1498_v61 = vpop.permute.xlu1 %1497 }
 0x42a   :  { %v1508_v11 = vadd.f32 %v1498_v61, %v1476_v19  ;;  %v1519_v5 = vmax.f32 %v1515_v6, 0.0 }
 0x42c   :  { %v1514_v17 = vadd.f32 %v1512_v29, %v1508_v11  ;;  %v1528_v9 = vrot.slane %v1519_v5, 1 }
 0x42d   :  { %v1502_v48 = vpop.permute.xlu1 %1501 }
 0x42e   :  { %v1518_v62 = vmax.f32 %v1514_v17, 0.0  ;;  %v1510_v45 = vadd.f32 %v1502_v48, %v1478_v20 }
 0x430   :  { %v1526_v55 = vrot.slane %v1518_v62, 1  ;;  %v1516_v12 = vadd.f32 %v1512_v29, %v1510_v45 }
 0x432   :  { %v1527_v22 = vsel %vm127_vm5, %v1525_v32, %v1526_v55  ;;  %v1520_v37 = vmax.f32 %v1516_v12, 0.0 }
 0x433   :  { %v1533_v26 = vmax.f32 %v1517_v56, %v1527_v22 }
 0x434   :  { %v1529_v33 = vrot.slane %v1520_v37, 1 }
 0x435   :  { %1537 = vrot.lane.b32.xlu0 %v1533_v26, %s1760_s21 }
 0x436   :  { %v1530_v21 = vsel %vm127_vm5, %v1528_v9, %v1529_v33 }
 0x437   :  { %v1534_v49 = vmax.f32 %v1519_v5, %v1530_v21 }
 0x439   :  { %1539 = vrot.lane.b32.xlu1 %v1534_v49, %s1760_s21 }
 0x4a7   :  { %v1538_v39 = vpop.permute.xlu0 %1537 }
 0x4a8   :  { %v1543_v31 = vmax.f32 %v1533_v26, %v1538_v39 }
 0x4aa   :  { %1545 = vst.msk [vmem:[#allocation5] sm:$0xff] %vm828_vm6, %v1543_v31  ;;  %1549 = vrot.lane.b32.xlu0 %v1543_v31, %s1760_s21 }
 0x4ab   :  { %v1540_v30 = vpop.permute.xlu1 %1539 }
 0x4ac   :  { %v1544_v35 = vmax.f32 %v1534_v49, %v1540_v30 }
 0x4ae   :  { %1546 = vst.msk [vmem:[#allocation5 + $0x8] sm:$0xff] %vm828_vm6, %v1544_v35  ;;  %1551 = vrot.lane.b32.xlu1 %v1544_v35, %s1760_s21  ;;  %1557 = vrot.lane.b32.xlu0 %v1543_v31, %s1761_s23  ;;  %s1768_s21 = smov 12  }
 0x4b2   :  { %1559 = vrot.lane.b32.xlu1 %v1544_v35, %s1761_s23  ;;  %1565 = vrot.lane.b32.xlu0 %v1543_v31, %s1762_s24  ;;  %s1622_s23 = sshll.u32 %s1769_s22, 4  ;;  %s1623_s23 = int_to_ptr.vmem [resolvable:$true] %s1622_s23 }
 0x4b3   :  { %p1730_p11 = scmp.lt.s32.totalorder %s1623_s23, %s1623_s23 }
 0x4b6   :  { %1567 = vrot.lane.b32.xlu1 %v1544_v35, %s1762_s24 }
 0x51c   :  { %v1550_v46 = vpop.permute.xlu0 %1549 }
 0x51d   :  { %1555 = vst.msk [vmem:[#allocation5] sm:$0xff] %vm849_vm8, %v1550_v46 }
 0x520   :  { %v1552_v51 = vpop.permute.xlu1 %1551  ;;  %v1558_v4 = vpop.permute.xlu0 %1557 }
 0x521   :  { %1556 = vst.msk [vmem:[#allocation5 + $0x8] sm:$0xff] %vm849_vm8, %v1552_v51 }
 0x522   :  { %1563 = vst.msk [vmem:[#allocation5] sm:$0xff] %vm866_vm9, %v1558_v4 }
 0x524   :  { %v1560_v63 = vpop.permute.xlu1 %1559  ;;  %v1566_v54 = vpop.permute.xlu0 %1565 }
 0x525   :  { %1564 = vst.msk [vmem:[#allocation5 + $0x8] sm:$0xff] %vm866_vm9, %v1560_v63 }
 0x526   :  { %1571 = vst.msk [vmem:[#allocation5] sm:$0xff] %vm883_vm10, %v1566_v54 }
 0x528   :  { %v1568_v24 = vpop.permute.xlu1 %1567 }
 0x529   :  { %1572 = vst.msk [vmem:[#allocation5 + $0x8] sm:$0xff] %vm883_vm10, %v1568_v24 }
 0x52d   :  { %v1578_v34 = vld [vmem:[#allocation5 + $0x2] sm:$0x1]  ;;  %v1573_v28 = vld [vmem:[#allocation5] sm:$0x1]  ;;  %v1591_v0 = vld [vmem:[#allocation5 + $0x4] sm:$0x1] }
 0x52e   :  { %1582 = vrot.lane.b32.xlu0 %v1578_v34, %s1767_s4  ;;  %1576 = vst.msk [vmem:[#allocation15] sm:$0x1] %vm1575_vm1, %v1573_v28  ;;  %v1604_v58 = vld [vmem:[#allocation5 + $0x6] sm:$0x1] }
 0x530   :  { %v1579_v44 = vld [vmem:[#allocation5 + $0xa] sm:$0x1]  ;;  %v1574_v52 = vld [vmem:[#allocation5 + $0x8] sm:$0x1]  ;;  %v1592_v57 = vld [vmem:[#allocation5 + $0xc] sm:$0x1] }
 0x531   :  { %1584 = vrot.lane.b32.xlu1 %v1579_v44, %s1767_s4  ;;  %1577 = vst.msk [vmem:[#allocation15 + $0x1] sm:$0x1] %vm1575_vm1, %v1574_v52  ;;  %v1605_v14 = vld [vmem:[#allocation5 + $0xe] sm:$0x1] }
 0x532   :  { %1595 = vrot.lane.b32.xlu0 %v1591_v0, %s1755_s25 }
 0x535   :  { %1597 = vrot.lane.b32.xlu1 %v1592_v57, %s1755_s25  ;;  %s1725_s25 = scalar_lea.vmem %s1623_s23, 32 }
 0x536   :  { %1608 = vrot.lane.b32.xlu0 %v1604_v58, %s1768_s21  ;;  %p1726_p10 = scmp.ne.s32.totalorder %s1623_s23, %s1725_s25  ;;  %p1731_p12 = scmp.lt.s32.totalorder %s1725_s25, %s1725_s25 }
 0x538   :  { %p1732_p13 = por %p1731_p12, %p1730_p11 }
 0x539   :  { %1610 = vrot.lane.b32.xlu1 %v1605_v14, %s1768_s21 }
 0x53a   :  { %p1733_p0 = pnand %p1732_p13, %p1726_p10 }
 0x5a0   :  { %v1583_v3 = vpop.permute.xlu0 %1582 }
 0x5a1   :  { %1589 = vst.msk [vmem:[#allocation15] sm:$0x1] %vm1588_vm2, %v1583_v3 }
 0x5a3   :  { %v1585_v27 = vpop.permute.xlu1 %1584 }
 0x5a4   :  { %v1596_v7 = vpop.permute.xlu0 %1595  ;;  %1590 = vst.msk [vmem:[#allocation15 + $0x1] sm:$0x1] %vm1588_vm2, %v1585_v27 }
 0x5a5   :  { %1602 = vst.msk [vmem:[#allocation15] sm:$0x1] %vm1601_vm3, %v1596_v7 }
 0x5a7   :  { %v1598_v16 = vpop.permute.xlu1 %1597 }
 0x5a8   :  { %v1609_v47 = vpop.permute.xlu0 %1608  ;;  %1603 = vst.msk [vmem:[#allocation15 + $0x1] sm:$0x1] %vm1601_vm3, %v1598_v16 }
 0x5a9   :  { %1615 = vst.msk [vmem:[#allocation15] sm:$0x1] %vm1614_vm4, %v1609_v47 }
 0x5ab   :  { %v1611_v25 = vpop.permute.xlu1 %1610 }
 0x5ac   :  { %1616 = vst.msk [vmem:[#allocation15 + $0x1] sm:$0x1] %vm1614_vm4, %v1611_v25 }
 0x5ad   :  { %1736 = shalt.err (!%p1733_p0)
}
 0x5ae   :  { %s1770_s24 = smov 16   ;;  %s1771_s26 = smov 1  }
 0x5af   :  { %1628 = dma.vmem_to_hbm [thread:$0]  %s1623_s23, 32, %s2972_s5, [#allocation10], %s1770_s24, %s1770_s24, %s1771_s26  }
 0x5b0   :  { %1751 = dma.done.wait [#allocation10], 32  }
 0x5b1   :  { %1752 = vsyncadd [#allocation10], 4294967264 }
 0x5b2   :  { %1632 = vsyncpa [#allocation9], 1 }
 0x5b3   :  { %1633 = vsyncpa [#allocation10], 1 }
 0x5b4   :  { %1634 = vsyncpa [#allocation11], 1 }
 0x5b5   :  { %1635 = vsyncpa [#allocation12], 1 }

</bundles_post_ra>
